<compile_context>
chip_gen: v7x
topology: tpu7x:2x2x1
jax: 0.10.0
libtpu: 0.0.40
codegen_flags: <defaults>
</compile_context>

<pallas_src>
import functools

import jax
import jax.numpy as jnp
from jax.experimental import pallas as pl
from jax.experimental.pallas import tpu as pltpu


def _round_up(x, m):
    return (x + m - 1) // m * m


# ----------------------------------------------------------------------------
# Tiled matmul + bias + (ReLU) kernel
# ----------------------------------------------------------------------------
def _mm_bias_kernel(a_ref, b_ref, bias_ref, o_ref, acc_ref, *, relu):
    k = pl.program_id(2)

    @pl.when(k == 0)
    def _():
        acc_ref[...] = jnp.zeros_like(acc_ref)

    acc_ref[...] += jnp.dot(a_ref[...], b_ref[...],
                            preferred_element_type=jnp.float32)

    @pl.when(k == pl.num_programs(2) - 1)
    def _():
        out = acc_ref[...] + bias_ref[...]     # bias (1, tn) broadcasts
        if relu:
            out = jnp.maximum(out, 0.0)
        o_ref[...] = out.astype(o_ref.dtype)


def matmul_bias_act(a, b, bias, *, relu, tm=512, tn=256, tk=512):
    """act(a @ b + bias).

    a:(M,K) b:(K,N) bias:(1,N) float32.
    Returns (M, Np) with Np = N rounded up to a lane-dense multiple of 128
    (padded output columns are exact zeros / bias-zeros); caller slices.
    """
    M, K = a.shape
    K2, N = b.shape
    assert K == K2

    # pad every dim to tile multiples (lane-dense N/K, sublane-aligned M)
    Mp = _round_up(M, 8)
    if Mp > tm:
        Mp = _round_up(Mp, tm)
    bm = min(tm, Mp)

    Np = _round_up(N, 128)
    if Np > tn:
        Np = _round_up(Np, tn)
    bn = min(tn, Np)

    Kp = _round_up(K, 128)
    if Kp > tk:
        Kp = _round_up(Kp, tk)
    bk = min(tk, Kp)

    a_p = jnp.pad(a, ((0, Mp - M), (0, Kp - K)))
    b_p = jnp.pad(b, ((0, Kp - K), (0, Np - N)))
    bias_p = jnp.pad(bias, ((0, 0), (0, Np - N)))

    grid = (Mp // bm, Np // bn, Kp // bk)

    out = pl.pallas_call(
        functools.partial(_mm_bias_kernel, relu=relu),
        out_shape=jax.ShapeDtypeStruct((Mp, Np), jnp.float32),
        grid_spec=pltpu.PrefetchScalarGridSpec(
            num_scalar_prefetch=0,
            grid=grid,
            in_specs=[
                pl.BlockSpec((bm, bk), lambda i, j, k: (i, k)),
                pl.BlockSpec((bk, bn), lambda i, j, k: (k, j)),
                pl.BlockSpec((1, bn), lambda i, j, k: (0, j)),
            ],
            out_specs=pl.BlockSpec((bm, bn), lambda i, j, k: (i, j)),
            scratch_shapes=[pltpu.VMEM((bm, bn), jnp.float32)],
        ),
        compiler_params=pltpu.CompilerParams(
            dimension_semantics=("parallel", "parallel", "arbitrary")),
        cost_estimate=pl.CostEstimate(
            flops=2 * Mp * Np * Kp,
            transcendentals=0,
            bytes_accessed=4 * (Mp * Kp + Kp * Np + Mp * Np)),
    )(a_p, b_p, bias_p)

    return out[:M]                       # keep lane-dense padded columns


# ----------------------------------------------------------------------------
# Fused final Linear + log_softmax kernel (class dim padded to 128 lanes)
# ----------------------------------------------------------------------------
def _linear_logsoftmax_kernel(x_ref, w_ref, b_ref, o_ref, *, n_valid):
    logits = jnp.dot(x_ref[...], w_ref[...],
                     preferred_element_type=jnp.float32) + b_ref[...]
    col = jax.lax.broadcasted_iota(jnp.int32, logits.shape, 1)
    valid = col < n_valid
    masked = jnp.where(valid, logits, -1e30)
    m = jnp.max(masked, axis=1, keepdims=True)
    e = jnp.where(valid, jnp.exp(masked - m), 0.0)
    lse = jnp.log(jnp.sum(e, axis=1, keepdims=True)) + m
    o_ref[...] = (logits - lse).astype(o_ref.dtype)


def linear_logsoftmax(x, w_t, b, n_valid, *, tm=512):
    """log_softmax(x @ w_t + b)[:, :n_valid].  w_t is (in, out)."""
    M, K = x.shape
    K2, N = w_t.shape
    assert K == K2

    Mp = _round_up(M, 8)
    if Mp > tm:
        Mp = _round_up(Mp, tm)
    bm = min(tm, Mp)
    Kp = _round_up(K, 128)
    Np = _round_up(N, 128)

    x_p = jnp.pad(x, ((0, Mp - M), (0, Kp - K)))
    w_p = jnp.pad(w_t, ((0, Kp - K), (0, Np - N)))
    b_p = jnp.pad(b.reshape(1, -1), ((0, 0), (0, Np - N)))

    out = pl.pallas_call(
        functools.partial(_linear_logsoftmax_kernel, n_valid=n_valid),
        out_shape=jax.ShapeDtypeStruct((Mp, Np), jnp.float32),
        grid_spec=pltpu.PrefetchScalarGridSpec(
            num_scalar_prefetch=0,
            grid=(Mp // bm,),
            in_specs=[
                pl.BlockSpec((bm, Kp), lambda i: (i, 0)),
                pl.BlockSpec((Kp, Np), lambda i: (0, 0)),
                pl.BlockSpec((1, Np), lambda i: (0, 0)),
            ],
            out_specs=pl.BlockSpec((bm, Np), lambda i: (i, 0)),
        ),
        compiler_params=pltpu.CompilerParams(
            dimension_semantics=("parallel",)),
    )(x_p, w_p, b_p)

    return out[:M, :n_valid]


# ----------------------------------------------------------------------------
# Glue: im2col in NHWC (pixels-major), Conv2d(k=4, s=2, p=1)
# ----------------------------------------------------------------------------
def im2col_nhwc(x, k=4, s=2, p=1):
    N, H, W, C = x.shape
    Ho = (H + 2 * p - k) // s + 1
    Wo = (W + 2 * p - k) // s + 1
    xp = jnp.pad(x, ((0, 0), (p, p), (p, p), (0, 0)))
    cols = []
    for i in range(k):
        for j in range(k):
            cols.append(xp[:, i:i + s * Ho:s, j:j + s * Wo:s, :])  # (N,Ho,Wo,C)
    patches = jnp.concatenate(cols, axis=-1)        # feature order (kh, kw, C)
    return patches.reshape(N * Ho * Wo, k * k * C), Ho, Wo


def conv2d_relu(x, w, b):
    """x: (N, H, W, C_in) NHWC; w: (C_out, C_in, 4, 4) PyTorch; b: (C_out,)."""
    N = x.shape[0]
    c_out, c_in = w.shape[0], w.shape[1]
    patches, Ho, Wo = im2col_nhwc(x)
    # reorder weight rows once to (kh, kw, C_in) feature order, cols = C_out
    wm = jnp.transpose(w, (2, 3, 1, 0)).reshape(c_in * 16, c_out)
    out = matmul_bias_act(patches, wm, b.reshape(1, -1), relu=True)
    return out[:, :c_out].reshape(N, Ho, Wo, c_out)


# ----------------------------------------------------------------------------
# Conv module (forward)
# ----------------------------------------------------------------------------
def init_params(key, out_dim, imshape_1, imshape_2, in_chan=3):
    ks = jax.random.split(key, 12)
    flat = 64 * imshape_1 * imshape_2 // 256

    def w_init(k, shape, fan_in):
        return (jax.random.normal(k, shape, jnp.float32)
                / jnp.sqrt(jnp.float32(fan_in)))

    return {
        "conv1_w": w_init(ks[0], (32, in_chan, 4, 4), in_chan * 16),
        "conv1_b": w_init(ks[1], (32,), in_chan * 16),
        "conv2_w": w_init(ks[2], (32, 32, 4, 4), 32 * 16),
        "conv2_b": w_init(ks[3], (32,), 32 * 16),
        "conv3_w": w_init(ks[4], (64, 32, 4, 4), 32 * 16),
        "conv3_b": w_init(ks[5], (64,), 32 * 16),
        "conv4_w": w_init(ks[6], (64, 64, 4, 4), 64 * 16),
        "conv4_b": w_init(ks[7], (64,), 64 * 16),
        "fc1_w": w_init(ks[8], (128, flat), flat),
        "fc1_b": w_init(ks[9], (128,), flat),
        "fc2_w": w_init(ks[10], (out_dim, 128), 128),
        "fc2_b": w_init(ks[11], (out_dim,), 128),
    }


def conv_forward(params, x, imshape_1, imshape_2):
    """x: (N, C, H, W) as in PyTorch.  Returns log_softmax logits (N, out)."""
    out_dim = params["fc2_w"].shape[0]
    flat = 64 * imshape_1 * imshape_2 // 256
    hf, wf = imshape_1 // 16, imshape_2 // 16

    # to NHWC once; the conv stack then stays pixels-major end to end
    x = jnp.transpose(x, (0, 2, 3, 1))

    x = conv2d_relu(x, params["conv1_w"], params["conv1_b"])
    x = conv2d_relu(x, params["conv2_w"], params["conv2_b"])
    x = conv2d_relu(x, params["conv3_w"], params["conv3_b"])
    x = conv2d_relu(x, params["conv4_w"], params["conv4_b"])

    # NHWC flatten; permute fc1 weight columns (tiny, once) instead of
    # transposing the activations back to NCHW.
    x = x.reshape(-1, flat)                                     # (N, h*w*64)
    fc1_wt = (params["fc1_w"].reshape(128, 64, hf, wf)
              .transpose(2, 3, 1, 0).reshape(flat, 128))        # (in, out)
    x = matmul_bias_act(x, fc1_wt, params["fc1_b"].reshape(1, -1), relu=True)
    x = x[:, :128]

    # fc2 + log_softmax fused in one kernel
    fc2_wt = params["fc2_w"].T                                  # (128, out)
    return linear_logsoftmax(x, fc2_wt, params["fc2_b"], out_dim)


# ----------------------------------------------------------------------------
# Pure-JAX reference (silent sanity check)
# ----------------------------------------------------------------------------
def _ref_forward(params, x, imshape_1, imshape_2):
    def conv(x, w, b):
        y = jax.lax.conv_general_dilated(
            x, w, window_strides=(2, 2), padding=((1, 1), (1, 1)),
            dimension_numbers=("NCHW", "OIHW", "NCHW"))
        return jnp.maximum(y + b[None, :, None, None], 0.0)

    x = conv(x, params["conv1_w"], params["conv1_b"])
    x = conv(x, params["conv2_w"], params["conv2_b"])
    x = conv(x, params["conv3_w"], params["conv3_b"])
    x = conv(x, params["conv4_w"], params["conv4_b"])
    x = x.reshape(-1, 64 * imshape_1 * imshape_2 // 256)
    x = jnp.maximum(x @ params["fc1_w"].T + params["fc1_b"], 0.0)
    x = x @ params["fc2_w"].T + params["fc2_b"]
    return jax.nn.log_softmax(x, axis=1)


if __name__ == "__main__":
    out_dim, imshape_1, imshape_2, in_chan = 10, 16, 16, 3
    batch = 2

    key = jax.random.PRNGKey(0)
    k_params, k_x = jax.random.split(key)
    params = init_params(k_params, out_dim, imshape_1, imshape_2, in_chan)
    x = jax.random.normal(k_x, (batch, in_chan, imshape_1, imshape_2),
                          jnp.float32)

    fwd = jax.jit(conv_forward, static_argnums=(2, 3))
    out = jax.block_until_ready(fwd(params, x, imshape_1, imshape_2))

    ref = jax.block_until_ready(_ref_forward(params, x, imshape_1, imshape_2))
    assert out.shape == (batch, out_dim)
    assert jnp.allclose(out, ref, atol=1e-4, rtol=1e-4)

    print("KERNEL_OK")
</pallas_src>

<mosaic_0001>
module attributes {stable_mosaic.version = 11 : i64} {
  func.func @_mm_bias_kernel(%arg0: i32, %arg1: i32, %arg2: i32, %arg3: memref<128x128xf32, #tpu.memory_space<vmem>>, %arg4: memref<128x128xf32, #tpu.memory_space<vmem>>, %arg5: memref<1x128xf32, #tpu.memory_space<vmem>>, %arg6: memref<128x128xf32, #tpu.memory_space<vmem>>, %arg7: memref<128x128xf32, #tpu.memory_space<vmem>>) attributes {dimension_semantics = [#tpu.dimension_semantics<parallel>, #tpu.dimension_semantics<parallel>, #tpu.dimension_semantics<arbitrary>], iteration_bounds = array<i64: 1, 1, 1>, scalar_prefetch = 0 : i64, scratch_operands = 1 : i64, tpu.core_type = #tpu.core_type<tc>, window_params = [{transform_indices = @transform_0, window_bounds = array<i64: 128, 128>}, {transform_indices = @transform_1, window_bounds = array<i64: 128, 128>}, {transform_indices = @transform_2, window_bounds = array<i64: 1, 128>}, {transform_indices = @transform_3, window_bounds = array<i64: 128, 128>}]} {
    %c0_i32 = arith.constant 0 : i32
    %0 = arith.cmpi eq, %arg2, %c0_i32 : i32
    %1 = arith.extui %0 : i1 to i32
    %c0_i32_0 = arith.constant 0 : i32
    %2 = arith.cmpi ne, %1, %c0_i32_0 : i32
    scf.if %2 {
      %cst_10 = arith.constant 0.000000e+00 : f32
      %12 = vector.broadcast %cst_10 : f32 to vector<128x128xf32>
      %c0_11 = arith.constant 0 : index
      %c0_12 = arith.constant 0 : index
      %13 = vector.load %arg7[%c0_11, %c0_12] : memref<128x128xf32, #tpu.memory_space<vmem>>, vector<128x128xf32>
      tpu.vector_store %arg7[%c0_11, %c0_12], %12 {strides = array<i32>} : memref<128x128xf32, #tpu.memory_space<vmem>>, vector<128x128xf32>,
    } else {
    }
    %c0 = arith.constant 0 : index
    %c0_1 = arith.constant 0 : index
    %3 = vector.load %arg7[%c0, %c0_1] : memref<128x128xf32, #tpu.memory_space<vmem>>, vector<128x128xf32>
    %c0_2 = arith.constant 0 : index
    %c0_3 = arith.constant 0 : index
    %4 = vector.load %arg3[%c0_2, %c0_3] : memref<128x128xf32, #tpu.memory_space<vmem>>, vector<128x128xf32>
    %c0_4 = arith.constant 0 : index
    %c0_5 = arith.constant 0 : index
    %5 = vector.load %arg4[%c0_4, %c0_5] : memref<128x128xf32, #tpu.memory_space<vmem>>, vector<128x128xf32>
    %cst = arith.constant dense<0.000000e+00> : vector<128x128xf32>
    %6 = tpu.matmul %4, %5, %cst {dimension_numbers = #tpu.dot_dimension_numbers<[1], [0], [0], [1], [0, 0, 1, 1], [], []>} : vector<128x128xf32>, vector<128x128xf32>, vector<128x128xf32> -> vector<128x128xf32>
    %7 = arith.addf %3, %6 : vector<128x128xf32>
    %c0_6 = arith.constant 0 : index
    %c0_7 = arith.constant 0 : index
    %8 = vector.load %arg7[%c0_6, %c0_7] : memref<128x128xf32, #tpu.memory_space<vmem>>, vector<128x128xf32>
    tpu.vector_store %arg7[%c0_6, %c0_7], %7 {strides = array<i32>} : memref<128x128xf32, #tpu.memory_space<vmem>>, vector<128x128xf32>,
    %c0_i32_8 = arith.constant 0 : i32
    %9 = arith.cmpi eq, %arg2, %c0_i32_8 : i32
    %10 = arith.extui %9 : i1 to i32
    %c0_i32_9 = arith.constant 0 : i32
    %11 = arith.cmpi ne, %10, %c0_i32_9 : i32
    scf.if %11 {
      %c0_10 = arith.constant 0 : index
      %c0_11 = arith.constant 0 : index
      %12 = vector.load %arg7[%c0_10, %c0_11] : memref<128x128xf32, #tpu.memory_space<vmem>>, vector<128x128xf32>
      %c0_12 = arith.constant 0 : index
      %c0_13 = arith.constant 0 : index
      %13 = vector.load %arg5[%c0_12, %c0_13] : memref<1x128xf32, #tpu.memory_space<vmem>>, vector<1x128xf32>
      %14 = vector.broadcast %13 : vector<1x128xf32> to vector<128x128xf32>
      %15 = arith.addf %12, %14 : vector<128x128xf32>
      %cst_14 = arith.constant 0.000000e+00 : f32
      %16 = vector.broadcast %cst_14 : f32 to vector<128x128xf32>
      %17 = arith.maximumf %15, %16 : vector<128x128xf32>
      %c0_15 = arith.constant 0 : index
      %c0_16 = arith.constant 0 : index
      %18 = vector.load %arg6[%c0_15, %c0_16] : memref<128x128xf32, #tpu.memory_space<vmem>>, vector<128x128xf32>
      tpu.vector_store %arg6[%c0_15, %c0_16], %17 {strides = array<i32>} : memref<128x128xf32, #tpu.memory_space<vmem>>, vector<128x128xf32>,
    } else {
    }
    return
  }
  func.func @transform_0(%arg0: i32, %arg1: i32, %arg2: i32) -> (i32, i32) {
    %c0_i32 = arith.constant 0 : i32
    return %arg0, %arg2 : i32, i32
  }
  func.func @transform_1(%arg0: i32, %arg1: i32, %arg2: i32) -> (i32, i32) {
    %c0_i32 = arith.constant 0 : i32
    return %arg2, %arg1 : i32, i32
  }
  func.func @transform_2(%arg0: i32, %arg1: i32, %arg2: i32) -> (i32, i32) {
    %c0_i32 = arith.constant 0 : i32
    %c0_i32_0 = arith.constant 0 : i32
    return %c0_i32, %arg1 : i32, i32
  }
  func.func @transform_3(%arg0: i32, %arg1: i32, %arg2: i32) -> (i32, i32) {
    %c0_i32 = arith.constant 0 : i32
    return %arg0, %arg1 : i32, i32
  }
}

module attributes {stable_mosaic.version = 11 : i64} {
  func.func @_mm_bias_kernel(%arg0: i32, %arg1: i32, %arg2: i32, %arg3: memref<32x512xf32, #tpu.memory_space<vmem>>, %arg4: memref<512x128xf32, #tpu.memory_space<vmem>>, %arg5: memref<1x128xf32, #tpu.memory_space<vmem>>, %arg6: memref<32x128xf32, #tpu.memory_space<vmem>>, %arg7: memref<32x128xf32, #tpu.memory_space<vmem>>) attributes {dimension_semantics = [#tpu.dimension_semantics<parallel>, #tpu.dimension_semantics<parallel>, #tpu.dimension_semantics<arbitrary>], iteration_bounds = array<i64: 1, 1, 1>, scalar_prefetch = 0 : i64, scratch_operands = 1 : i64, tpu.core_type = #tpu.core_type<tc>, window_params = [{transform_indices = @transform_0, window_bounds = array<i64: 32, 512>}, {transform_indices = @transform_1, window_bounds = array<i64: 512, 128>}, {transform_indices = @transform_2, window_bounds = array<i64: 1, 128>}, {transform_indices = @transform_3, window_bounds = array<i64: 32, 128>}]} {
    %c0_i32 = arith.constant 0 : i32
    %0 = arith.cmpi eq, %arg2, %c0_i32 : i32
    %1 = arith.extui %0 : i1 to i32
    %c0_i32_0 = arith.constant 0 : i32
    %2 = arith.cmpi ne, %1, %c0_i32_0 : i32
    scf.if %2 {
      %cst_10 = arith.constant 0.000000e+00 : f32
      %12 = vector.broadcast %cst_10 : f32 to vector<32x128xf32>
      %c0_11 = arith.constant 0 : index
      %c0_12 = arith.constant 0 : index
      %13 = vector.load %arg7[%c0_11, %c0_12] : memref<32x128xf32, #tpu.memory_space<vmem>>, vector<32x128xf32>
      tpu.vector_store %arg7[%c0_11, %c0_12], %12 {strides = array<i32>} : memref<32x128xf32, #tpu.memory_space<vmem>>, vector<32x128xf32>,
    } else {
    }
    %c0 = arith.constant 0 : index
    %c0_1 = arith.constant 0 : index
    %3 = vector.load %arg7[%c0, %c0_1] : memref<32x128xf32, #tpu.memory_space<vmem>>, vector<32x128xf32>
    %c0_2 = arith.constant 0 : index
    %c0_3 = arith.constant 0 : index
    %4 = vector.load %arg3[%c0_2, %c0_3] : memref<32x512xf32, #tpu.memory_space<vmem>>, vector<32x512xf32>
    %c0_4 = arith.constant 0 : index
    %c0_5 = arith.constant 0 : index
    %5 = vector.load %arg4[%c0_4, %c0_5] : memref<512x128xf32, #tpu.memory_space<vmem>>, vector<512x128xf32>
    %cst = arith.constant dense<0.000000e+00> : vector<32x128xf32>
    %6 = tpu.matmul %4, %5, %cst {dimension_numbers = #tpu.dot_dimension_numbers<[1], [0], [0], [1], [0, 0, 1, 1], [], []>} : vector<32x512xf32>, vector<512x128xf32>, vector<32x128xf32> -> vector<32x128xf32>
    %7 = arith.addf %3, %6 : vector<32x128xf32>
    %c0_6 = arith.constant 0 : index
    %c0_7 = arith.constant 0 : index
    %8 = vector.load %arg7[%c0_6, %c0_7] : memref<32x128xf32, #tpu.memory_space<vmem>>, vector<32x128xf32>
    tpu.vector_store %arg7[%c0_6, %c0_7], %7 {strides = array<i32>} : memref<32x128xf32, #tpu.memory_space<vmem>>, vector<32x128xf32>,
    %c0_i32_8 = arith.constant 0 : i32
    %9 = arith.cmpi eq, %arg2, %c0_i32_8 : i32
    %10 = arith.extui %9 : i1 to i32
    %c0_i32_9 = arith.constant 0 : i32
    %11 = arith.cmpi ne, %10, %c0_i32_9 : i32
    scf.if %11 {
      %c0_10 = arith.constant 0 : index
      %c0_11 = arith.constant 0 : index
      %12 = vector.load %arg7[%c0_10, %c0_11] : memref<32x128xf32, #tpu.memory_space<vmem>>, vector<32x128xf32>
      %c0_12 = arith.constant 0 : index
      %c0_13 = arith.constant 0 : index
      %13 = vector.load %arg5[%c0_12, %c0_13] : memref<1x128xf32, #tpu.memory_space<vmem>>, vector<1x128xf32>
      %14 = vector.broadcast %13 : vector<1x128xf32> to vector<32x128xf32>
      %15 = arith.addf %12, %14 : vector<32x128xf32>
      %cst_14 = arith.constant 0.000000e+00 : f32
      %16 = vector.broadcast %cst_14 : f32 to vector<32x128xf32>
      %17 = arith.maximumf %15, %16 : vector<32x128xf32>
      %c0_15 = arith.constant 0 : index
      %c0_16 = arith.constant 0 : index
      %18 = vector.load %arg6[%c0_15, %c0_16] : memref<32x128xf32, #tpu.memory_space<vmem>>, vector<32x128xf32>
      tpu.vector_store %arg6[%c0_15, %c0_16], %17 {strides = array<i32>} : memref<32x128xf32, #tpu.memory_space<vmem>>, vector<32x128xf32>,
    } else {
    }
    return
  }
  func.func @transform_0(%arg0: i32, %arg1: i32, %arg2: i32) -> (i32, i32) {
    %c0_i32 = arith.constant 0 : i32
    return %arg0, %arg2 : i32, i32
  }
  func.func @transform_1(%arg0: i32, %arg1: i32, %arg2: i32) -> (i32, i32) {
    %c0_i32 = arith.constant 0 : i32
    return %arg2, %arg1 : i32, i32
  }
  func.func @transform_2(%arg0: i32, %arg1: i32, %arg2: i32) -> (i32, i32) {
    %c0_i32 = arith.constant 0 : i32
    %c0_i32_0 = arith.constant 0 : i32
    return %c0_i32, %arg1 : i32, i32
  }
  func.func @transform_3(%arg0: i32, %arg1: i32, %arg2: i32) -> (i32, i32) {
    %c0_i32 = arith.constant 0 : i32
    return %arg0, %arg1 : i32, i32
  }
}

module attributes {stable_mosaic.version = 11 : i64} {
  func.func @_mm_bias_kernel(%arg0: i32, %arg1: i32, %arg2: i32, %arg3: memref<8x512xf32, #tpu.memory_space<vmem>>, %arg4: memref<512x128xf32, #tpu.memory_space<vmem>>, %arg5: memref<1x128xf32, #tpu.memory_space<vmem>>, %arg6: memref<8x128xf32, #tpu.memory_space<vmem>>, %arg7: memref<8x128xf32, #tpu.memory_space<vmem>>) attributes {dimension_semantics = [#tpu.dimension_semantics<parallel>, #tpu.dimension_semantics<parallel>, #tpu.dimension_semantics<arbitrary>], iteration_bounds = array<i64: 1, 1, 1>, scalar_prefetch = 0 : i64, scratch_operands = 1 : i64, tpu.core_type = #tpu.core_type<tc>, window_params = [{transform_indices = @transform_0, window_bounds = array<i64: 8, 512>}, {transform_indices = @transform_1, window_bounds = array<i64: 512, 128>}, {transform_indices = @transform_2, window_bounds = array<i64: 1, 128>}, {transform_indices = @transform_3, window_bounds = array<i64: 8, 128>}]} {
    %c0_i32 = arith.constant 0 : i32
    %0 = arith.cmpi eq, %arg2, %c0_i32 : i32
    %1 = arith.extui %0 : i1 to i32
    %c0_i32_0 = arith.constant 0 : i32
    %2 = arith.cmpi ne, %1, %c0_i32_0 : i32
    scf.if %2 {
      %cst_10 = arith.constant 0.000000e+00 : f32
      %12 = vector.broadcast %cst_10 : f32 to vector<8x128xf32>
      %c0_11 = arith.constant 0 : index
      %c0_12 = arith.constant 0 : index
      %13 = vector.load %arg7[%c0_11, %c0_12] : memref<8x128xf32, #tpu.memory_space<vmem>>, vector<8x128xf32>
      tpu.vector_store %arg7[%c0_11, %c0_12], %12 {strides = array<i32>} : memref<8x128xf32, #tpu.memory_space<vmem>>, vector<8x128xf32>,
    } else {
    }
    %c0 = arith.constant 0 : index
    %c0_1 = arith.constant 0 : index
    %3 = vector.load %arg7[%c0, %c0_1] : memref<8x128xf32, #tpu.memory_space<vmem>>, vector<8x128xf32>
    %c0_2 = arith.constant 0 : index
    %c0_3 = arith.constant 0 : index
    %4 = vector.load %arg3[%c0_2, %c0_3] : memref<8x512xf32, #tpu.memory_space<vmem>>, vector<8x512xf32>
    %c0_4 = arith.constant 0 : index
    %c0_5 = arith.constant 0 : index
    %5 = vector.load %arg4[%c0_4, %c0_5] : memref<512x128xf32, #tpu.memory_space<vmem>>, vector<512x128xf32>
    %cst = arith.constant dense<0.000000e+00> : vector<8x128xf32>
    %6 = tpu.matmul %4, %5, %cst {dimension_numbers = #tpu.dot_dimension_numbers<[1], [0], [0], [1], [0, 0, 1, 1], [], []>} : vector<8x512xf32>, vector<512x128xf32>, vector<8x128xf32> -> vector<8x128xf32>
    %7 = arith.addf %3, %6 : vector<8x128xf32>
    %c0_6 = arith.constant 0 : index
    %c0_7 = arith.constant 0 : index
    %8 = vector.load %arg7[%c0_6, %c0_7] : memref<8x128xf32, #tpu.memory_space<vmem>>, vector<8x128xf32>
    tpu.vector_store %arg7[%c0_6, %c0_7], %7 {strides = array<i32>} : memref<8x128xf32, #tpu.memory_space<vmem>>, vector<8x128xf32>,
    %c0_i32_8 = arith.constant 0 : i32
    %9 = arith.cmpi eq, %arg2, %c0_i32_8 : i32
    %10 = arith.extui %9 : i1 to i32
    %c0_i32_9 = arith.constant 0 : i32
    %11 = arith.cmpi ne, %10, %c0_i32_9 : i32
    scf.if %11 {
      %c0_10 = arith.constant 0 : index
      %c0_11 = arith.constant 0 : index
      %12 = vector.load %arg7[%c0_10, %c0_11] : memref<8x128xf32, #tpu.memory_space<vmem>>, vector<8x128xf32>
      %c0_12 = arith.constant 0 : index
      %c0_13 = arith.constant 0 : index
      %13 = vector.load %arg5[%c0_12, %c0_13] : memref<1x128xf32, #tpu.memory_space<vmem>>, vector<1x128xf32>
      %14 = vector.broadcast %13 : vector<1x128xf32> to vector<8x128xf32>
      %15 = arith.addf %12, %14 : vector<8x128xf32>
      %cst_14 = arith.constant 0.000000e+00 : f32
      %16 = vector.broadcast %cst_14 : f32 to vector<8x128xf32>
      %17 = arith.maximumf %15, %16 : vector<8x128xf32>
      %c0_15 = arith.constant 0 : index
      %c0_16 = arith.constant 0 : index
      %18 = vector.load %arg6[%c0_15, %c0_16] : memref<8x128xf32, #tpu.memory_space<vmem>>, vector<8x128xf32>
      tpu.vector_store %arg6[%c0_15, %c0_16], %17 {strides = array<i32>} : memref<8x128xf32, #tpu.memory_space<vmem>>, vector<8x128xf32>,
    } else {
    }
    return
  }
  func.func @transform_0(%arg0: i32, %arg1: i32, %arg2: i32) -> (i32, i32) {
    %c0_i32 = arith.constant 0 : i32
    return %arg0, %arg2 : i32, i32
  }
  func.func @transform_1(%arg0: i32, %arg1: i32, %arg2: i32) -> (i32, i32) {
    %c0_i32 = arith.constant 0 : i32
    return %arg2, %arg1 : i32, i32
  }
  func.func @transform_2(%arg0: i32, %arg1: i32, %arg2: i32) -> (i32, i32) {
    %c0_i32 = arith.constant 0 : i32
    %c0_i32_0 = arith.constant 0 : i32
    return %c0_i32, %arg1 : i32, i32
  }
  func.func @transform_3(%arg0: i32, %arg1: i32, %arg2: i32) -> (i32, i32) {
    %c0_i32 = arith.constant 0 : i32
    return %arg0, %arg1 : i32, i32
  }
}

module attributes {stable_mosaic.version = 11 : i64} {
  func.func @_mm_bias_kernel(%arg0: i32, %arg1: i32, %arg2: i32, %arg3: memref<8x512xf32, #tpu.memory_space<vmem>>, %arg4: memref<512x128xf32, #tpu.memory_space<vmem>>, %arg5: memref<1x128xf32, #tpu.memory_space<vmem>>, %arg6: memref<8x128xf32, #tpu.memory_space<vmem>>, %arg7: memref<8x128xf32, #tpu.memory_space<vmem>>) attributes {dimension_semantics = [#tpu.dimension_semantics<parallel>, #tpu.dimension_semantics<parallel>, #tpu.dimension_semantics<arbitrary>], iteration_bounds = array<i64: 1, 1, 2>, scalar_prefetch = 0 : i64, scratch_operands = 1 : i64, tpu.core_type = #tpu.core_type<tc>, window_params = [{transform_indices = @transform_0, window_bounds = array<i64: 8, 512>}, {transform_indices = @transform_1, window_bounds = array<i64: 512, 128>}, {transform_indices = @transform_2, window_bounds = array<i64: 1, 128>}, {transform_indices = @transform_3, window_bounds = array<i64: 8, 128>}]} {
    %c0_i32 = arith.constant 0 : i32
    %0 = arith.cmpi eq, %arg2, %c0_i32 : i32
    %1 = arith.extui %0 : i1 to i32
    %c0_i32_0 = arith.constant 0 : i32
    %2 = arith.cmpi ne, %1, %c0_i32_0 : i32
    scf.if %2 {
      %cst_9 = arith.constant 0.000000e+00 : f32
      %12 = vector.broadcast %cst_9 : f32 to vector<8x128xf32>
      %c0_10 = arith.constant 0 : index
      %c0_11 = arith.constant 0 : index
      %13 = vector.load %arg7[%c0_10, %c0_11] : memref<8x128xf32, #tpu.memory_space<vmem>>, vector<8x128xf32>
      tpu.vector_store %arg7[%c0_10, %c0_11], %12 {strides = array<i32>} : memref<8x128xf32, #tpu.memory_space<vmem>>, vector<8x128xf32>,
    } else {
    }
    %c0 = arith.constant 0 : index
    %c0_1 = arith.constant 0 : index
    %3 = vector.load %arg7[%c0, %c0_1] : memref<8x128xf32, #tpu.memory_space<vmem>>, vector<8x128xf32>
    %c0_2 = arith.constant 0 : index
    %c0_3 = arith.constant 0 : index
    %4 = vector.load %arg3[%c0_2, %c0_3] : memref<8x512xf32, #tpu.memory_space<vmem>>, vector<8x512xf32>
    %c0_4 = arith.constant 0 : index
    %c0_5 = arith.constant 0 : index
    %5 = vector.load %arg4[%c0_4, %c0_5] : memref<512x128xf32, #tpu.memory_space<vmem>>, vector<512x128xf32>
    %cst = arith.constant dense<0.000000e+00> : vector<8x128xf32>
    %6 = tpu.matmul %4, %5, %cst {dimension_numbers = #tpu.dot_dimension_numbers<[1], [0], [0], [1], [0, 0, 1, 1], [], []>} : vector<8x512xf32>, vector<512x128xf32>, vector<8x128xf32> -> vector<8x128xf32>
    %7 = arith.addf %3, %6 : vector<8x128xf32>
    %c0_6 = arith.constant 0 : index
    %c0_7 = arith.constant 0 : index
    %8 = vector.load %arg7[%c0_6, %c0_7] : memref<8x128xf32, #tpu.memory_space<vmem>>, vector<8x128xf32>
    tpu.vector_store %arg7[%c0_6, %c0_7], %7 {strides = array<i32>} : memref<8x128xf32, #tpu.memory_space<vmem>>, vector<8x128xf32>,
    %c1_i32 = arith.constant 1 : i32
    %9 = arith.cmpi eq, %arg2, %c1_i32 : i32
    %10 = arith.extui %9 : i1 to i32
    %c0_i32_8 = arith.constant 0 : i32
    %11 = arith.cmpi ne, %10, %c0_i32_8 : i32
    scf.if %11 {
      %c0_9 = arith.constant 0 : index
      %c0_10 = arith.constant 0 : index
      %12 = vector.load %arg7[%c0_9, %c0_10] : memref<8x128xf32, #tpu.memory_space<vmem>>, vector<8x128xf32>
      %c0_11 = arith.constant 0 : index
      %c0_12 = arith.constant 0 : index
      %13 = vector.load %arg5[%c0_11, %c0_12] : memref<1x128xf32, #tpu.memory_space<vmem>>, vector<1x128xf32>
      %14 = vector.broadcast %13 : vector<1x128xf32> to vector<8x128xf32>
      %15 = arith.addf %12, %14 : vector<8x128xf32>
      %cst_13 = arith.constant 0.000000e+00 : f32
      %16 = vector.broadcast %cst_13 : f32 to vector<8x128xf32>
      %17 = arith.maximumf %15, %16 : vector<8x128xf32>
      %c0_14 = arith.constant 0 : index
      %c0_15 = arith.constant 0 : index
      %18 = vector.load %arg6[%c0_14, %c0_15] : memref<8x128xf32, #tpu.memory_space<vmem>>, vector<8x128xf32>
      tpu.vector_store %arg6[%c0_14, %c0_15], %17 {strides = array<i32>} : memref<8x128xf32, #tpu.memory_space<vmem>>, vector<8x128xf32>,
    } else {
    }
    return
  }
  func.func @transform_0(%arg0: i32, %arg1: i32, %arg2: i32) -> (i32, i32) {
    %c0_i32 = arith.constant 0 : i32
    return %arg0, %arg2 : i32, i32
  }
  func.func @transform_1(%arg0: i32, %arg1: i32, %arg2: i32) -> (i32, i32) {
    %c0_i32 = arith.constant 0 : i32
    return %arg2, %arg1 : i32, i32
  }
  func.func @transform_2(%arg0: i32, %arg1: i32, %arg2: i32) -> (i32, i32) {
    %c0_i32 = arith.constant 0 : i32
    %c0_i32_0 = arith.constant 0 : i32
    return %c0_i32, %arg1 : i32, i32
  }
  func.func @transform_3(%arg0: i32, %arg1: i32, %arg2: i32) -> (i32, i32) {
    %c0_i32 = arith.constant 0 : i32
    return %arg0, %arg1 : i32, i32
  }
}

module attributes {stable_mosaic.version = 11 : i64} {
  func.func @_mm_bias_kernel(%arg0: i32, %arg1: i32, %arg2: i32, %arg3: memref<8x128xf32, #tpu.memory_space<vmem>>, %arg4: memref<128x128xf32, #tpu.memory_space<vmem>>, %arg5: memref<1x128xf32, #tpu.memory_space<vmem>>, %arg6: memref<8x128xf32, #tpu.memory_space<vmem>>, %arg7: memref<8x128xf32, #tpu.memory_space<vmem>>) attributes {dimension_semantics = [#tpu.dimension_semantics<parallel>, #tpu.dimension_semantics<parallel>, #tpu.dimension_semantics<arbitrary>], iteration_bounds = array<i64: 1, 1, 1>, scalar_prefetch = 0 : i64, scratch_operands = 1 : i64, tpu.core_type = #tpu.core_type<tc>, window_params = [{transform_indices = @transform_0, window_bounds = array<i64: 8, 128>}, {transform_indices = @transform_1, window_bounds = array<i64: 128, 128>}, {transform_indices = @transform_2, window_bounds = array<i64: 1, 128>}, {transform_indices = @transform_3, window_bounds = array<i64: 8, 128>}]} {
    %c0_i32 = arith.constant 0 : i32
    %0 = arith.cmpi eq, %arg2, %c0_i32 : i32
    %1 = arith.extui %0 : i1 to i32
    %c0_i32_0 = arith.constant 0 : i32
    %2 = arith.cmpi ne, %1, %c0_i32_0 : i32
    scf.if %2 {
      %cst_10 = arith.constant 0.000000e+00 : f32
      %12 = vector.broadcast %cst_10 : f32 to vector<8x128xf32>
      %c0_11 = arith.constant 0 : index
      %c0_12 = arith.constant 0 : index
      %13 = vector.load %arg7[%c0_11, %c0_12] : memref<8x128xf32, #tpu.memory_space<vmem>>, vector<8x128xf32>
      tpu.vector_store %arg7[%c0_11, %c0_12], %12 {strides = array<i32>} : memref<8x128xf32, #tpu.memory_space<vmem>>, vector<8x128xf32>,
    } else {
    }
    %c0 = arith.constant 0 : index
    %c0_1 = arith.constant 0 : index
    %3 = vector.load %arg7[%c0, %c0_1] : memref<8x128xf32, #tpu.memory_space<vmem>>, vector<8x128xf32>
    %c0_2 = arith.constant 0 : index
    %c0_3 = arith.constant 0 : index
    %4 = vector.load %arg3[%c0_2, %c0_3] : memref<8x128xf32, #tpu.memory_space<vmem>>, vector<8x128xf32>
    %c0_4 = arith.constant 0 : index
    %c0_5 = arith.constant 0 : index
    %5 = vector.load %arg4[%c0_4, %c0_5] : memref<128x128xf32, #tpu.memory_space<vmem>>, vector<128x128xf32>
    %cst = arith.constant dense<0.000000e+00> : vector<8x128xf32>
    %6 = tpu.matmul %4, %5, %cst {dimension_numbers = #tpu.dot_dimension_numbers<[1], [0], [0], [1], [0, 0, 1, 1], [], []>} : vector<8x128xf32>, vector<128x128xf32>, vector<8x128xf32> -> vector<8x128xf32>
    %7 = arith.addf %3, %6 : vector<8x128xf32>
    %c0_6 = arith.constant 0 : index
    %c0_7 = arith.constant 0 : index
    %8 = vector.load %arg7[%c0_6, %c0_7] : memref<8x128xf32, #tpu.memory_space<vmem>>, vector<8x128xf32>
    tpu.vector_store %arg7[%c0_6, %c0_7], %7 {strides = array<i32>} : memref<8x128xf32, #tpu.memory_space<vmem>>, vector<8x128xf32>,
    %c0_i32_8 = arith.constant 0 : i32
    %9 = arith.cmpi eq, %arg2, %c0_i32_8 : i32
    %10 = arith.extui %9 : i1 to i32
    %c0_i32_9 = arith.constant 0 : i32
    %11 = arith.cmpi ne, %10, %c0_i32_9 : i32
    scf.if %11 {
      %c0_10 = arith.constant 0 : index
      %c0_11 = arith.constant 0 : index
      %12 = vector.load %arg7[%c0_10, %c0_11] : memref<8x128xf32, #tpu.memory_space<vmem>>, vector<8x128xf32>
      %c0_12 = arith.constant 0 : index
      %c0_13 = arith.constant 0 : index
      %13 = vector.load %arg5[%c0_12, %c0_13] : memref<1x128xf32, #tpu.memory_space<vmem>>, vector<1x128xf32>
      %14 = vector.broadcast %13 : vector<1x128xf32> to vector<8x128xf32>
      %15 = arith.addf %12, %14 : vector<8x128xf32>
      %cst_14 = arith.constant 0.000000e+00 : f32
      %16 = vector.broadcast %cst_14 : f32 to vector<8x128xf32>
      %17 = arith.maximumf %15, %16 : vector<8x128xf32>
      %c0_15 = arith.constant 0 : index
      %c0_16 = arith.constant 0 : index
      %18 = vector.load %arg6[%c0_15, %c0_16] : memref<8x128xf32, #tpu.memory_space<vmem>>, vector<8x128xf32>
      tpu.vector_store %arg6[%c0_15, %c0_16], %17 {strides = array<i32>} : memref<8x128xf32, #tpu.memory_space<vmem>>, vector<8x128xf32>,
    } else {
    }
    return
  }
  func.func @transform_0(%arg0: i32, %arg1: i32, %arg2: i32) -> (i32, i32) {
    %c0_i32 = arith.constant 0 : i32
    return %arg0, %arg2 : i32, i32
  }
  func.func @transform_1(%arg0: i32, %arg1: i32, %arg2: i32) -> (i32, i32) {
    %c0_i32 = arith.constant 0 : i32
    return %arg2, %arg1 : i32, i32
  }
  func.func @transform_2(%arg0: i32, %arg1: i32, %arg2: i32) -> (i32, i32) {
    %c0_i32 = arith.constant 0 : i32
    %c0_i32_0 = arith.constant 0 : i32
    return %c0_i32, %arg1 : i32, i32
  }
  func.func @transform_3(%arg0: i32, %arg1: i32, %arg2: i32) -> (i32, i32) {
    %c0_i32 = arith.constant 0 : i32
    return %arg0, %arg1 : i32, i32
  }
}

module attributes {stable_mosaic.version = 11 : i64} {
  func.func @_linear_logsoftmax_kernel(%arg0: i32, %arg1: memref<8x128xf32, #tpu.memory_space<vmem>>, %arg2: memref<128x128xf32, #tpu.memory_space<vmem>>, %arg3: memref<1x128xf32, #tpu.memory_space<vmem>>, %arg4: memref<8x128xf32, #tpu.memory_space<vmem>>) attributes {dimension_semantics = [#tpu.dimension_semantics<parallel>], iteration_bounds = array<i64: 1>, scalar_prefetch = 0 : i64, scratch_operands = 0 : i64, tpu.core_type = #tpu.core_type<tc>, window_params = [{transform_indices = @transform_0, window_bounds = array<i64: 8, 128>}, {pipeline_mode = #tpu.pipeline_mode<synchronous>, transform_indices = @transform_1, window_bounds = array<i64: 128, 128>}, {pipeline_mode = #tpu.pipeline_mode<synchronous>, transform_indices = @transform_2, window_bounds = array<i64: 1, 128>}, {transform_indices = @transform_3, window_bounds = array<i64: 8, 128>}]} {
    %c0 = arith.constant 0 : index
    %c0_0 = arith.constant 0 : index
    %0 = vector.load %arg1[%c0, %c0_0] : memref<8x128xf32, #tpu.memory_space<vmem>>, vector<8x128xf32>
    %c0_1 = arith.constant 0 : index
    %c0_2 = arith.constant 0 : index
    %1 = vector.load %arg2[%c0_1, %c0_2] : memref<128x128xf32, #tpu.memory_space<vmem>>, vector<128x128xf32>
    %cst = arith.constant dense<0.000000e+00> : vector<8x128xf32>
    %2 = tpu.matmul %0, %1, %cst {dimension_numbers = #tpu.dot_dimension_numbers<[1], [0], [0], [1], [0, 0, 1, 1], [], []>} : vector<8x128xf32>, vector<128x128xf32>, vector<8x128xf32> -> vector<8x128xf32>
    %c0_3 = arith.constant 0 : index
    %c0_4 = arith.constant 0 : index
    %3 = vector.load %arg3[%c0_3, %c0_4] : memref<1x128xf32, #tpu.memory_space<vmem>>, vector<1x128xf32>
    %4 = vector.broadcast %3 : vector<1x128xf32> to vector<8x128xf32>
    %5 = arith.addf %2, %4 : vector<8x128xf32>
    %6 = tpu.iota {dimensions = array<i32: 1>} : vector<8x128xi32>
    %c10_i32 = arith.constant 10 : i32
    %7 = vector.broadcast %c10_i32 : i32 to vector<8x128xi32>
    %8 = arith.cmpi slt, %6, %7 : vector<8x128xi32>
    %cst_5 = arith.constant -1.000000e+30 : f32
    %9 = vector.broadcast %cst_5 : f32 to vector<8x128xf32>
    %10 = arith.select %8, %5, %9 : vector<8x128xi1>, vector<8x128xf32>
    %cst_6 = arith.constant dense<0xFF800000> : vector<8xf32>
    %11 = vector.multi_reduction <maximumf>, %10, %cst_6 [1] : vector<8x128xf32> to vector<8xf32>
    %12 = vector.shape_cast %11 : vector<8xf32> to vector<8x1xf32>
    %13 = vector.broadcast %12 : vector<8x1xf32> to vector<8x128xf32>
    %14 = arith.subf %10, %13 : vector<8x128xf32>
    %15 = math.exp %14 : vector<8x128xf32>
    %cst_7 = arith.constant 0.000000e+00 : f32
    %16 = vector.broadcast %cst_7 : f32 to vector<8x128xf32>
    %17 = arith.select %8, %15, %16 : vector<8x128xi1>, vector<8x128xf32>
    %cst_8 = arith.constant dense<0.000000e+00> : vector<8xf32>
    %18 = vector.multi_reduction <add>, %17, %cst_8 [1] : vector<8x128xf32> to vector<8xf32>
    %19 = vector.shape_cast %18 : vector<8xf32> to vector<8x1xf32>
    %20 = math.log %19 : vector<8x1xf32>
    %21 = arith.addf %20, %12 : vector<8x1xf32>
    %22 = vector.broadcast %21 : vector<8x1xf32> to vector<8x128xf32>
    %23 = arith.subf %5, %22 : vector<8x128xf32>
    %c0_9 = arith.constant 0 : index
    %c0_10 = arith.constant 0 : index
    %24 = vector.load %arg4[%c0_9, %c0_10] : memref<8x128xf32, #tpu.memory_space<vmem>>, vector<8x128xf32>
    tpu.vector_store %arg4[%c0_9, %c0_10], %23 {strides = array<i32>} : memref<8x128xf32, #tpu.memory_space<vmem>>, vector<8x128xf32>,
    return
  }
  func.func @transform_0(%arg0: i32) -> (i32, i32) {
    %c0_i32 = arith.constant 0 : i32
    %c0_i32_0 = arith.constant 0 : i32
    return %arg0, %c0_i32 : i32, i32
  }
  func.func @transform_1(%arg0: i32) -> (i32, i32) {
    %c0_i32 = arith.constant 0 : i32
    %c0_i32_0 = arith.constant 0 : i32
    %c0_i32_1 = arith.constant 0 : i32
    return %c0_i32, %c0_i32_0 : i32, i32
  }
  func.func @transform_2(%arg0: i32) -> (i32, i32) {
    %c0_i32 = arith.constant 0 : i32
    %c0_i32_0 = arith.constant 0 : i32
    %c0_i32_1 = arith.constant 0 : i32
    return %c0_i32, %c0_i32_0 : i32, i32
  }
  func.func @transform_3(%arg0: i32) -> (i32, i32) {
    %c0_i32 = arith.constant 0 : i32
    %c0_i32_0 = arith.constant 0 : i32
    return %arg0, %c0_i32 : i32, i32
  }
}

</mosaic_0001>

<bundles_post_ra>
// kernel: conv_forward.6
= control target key start
LH: loop header
LB: loop body
LE: loop exit
PB: predicated region body
PF: predicated region fallthrough
CT: control target
= control target key end

     0   :  { %s641_s1 = inlined_call_operand.vmem [shape: f32[128,128], index: 1, kind: input, shape index: {}]   ;;  %s642_s0 = inlined_call_operand.vmem [shape: f32[128,128], index: 0, kind: input, shape index: {}]   ;;  %s643_s2 = inlined_call_operand.vmem [shape: f32[1,128], index: 2, kind: input, shape index: {}]   ;;  %s644_s3 = inlined_call_operand.vmem [shape: f32[128,128], index: 3, kind: output, shape index: {}]  }
   0x1   :  { %v66_v0 = vld [vmem:[%s641_s1] sm:$0xff]  ;;  %v67_v1 = vld [vmem:[%s641_s1 + $0x8] sm:$0xff]  ;;  %v68_v2 = vld [vmem:[%s641_s1 + $0x10] sm:$0xff] }
   0x2   :  { %v426_v3 = vpack.c.bf16 %v67_v1, %v66_v0  ;;  %v69_v4 = vld [vmem:[%s641_s1 + $0x18] sm:$0xff]  ;;  %v70_v6 = vld [vmem:[%s641_s1 + $0x20] sm:$0xff]  ;;  %v71_v7 = vld [vmem:[%s641_s1 + $0x28] sm:$0xff] }
   0x3   :  { %v430_v5 = vpack.c.bf16 %v69_v4, %v68_v2  ;;  %v434_v8 = vpack.c.bf16 %v71_v7, %v70_v6  ;;  %v50_v9 = vld [vmem:[%s642_s0] sm:$0xff]  ;;  %v72_v11 = vld [vmem:[%s641_s1 + $0x30] sm:$0xff]  ;;  %v73_v12 = vld [vmem:[%s641_s1 + $0x38] sm:$0xff] }
   0x4   :  { %427 = vmatprep.subr.bf16.mxu0 %v426_v3  ;;  %458 = vmatprep.subr.bf16.mxu1 %v426_v3  ;;  %v58_v10 = vld [vmem:[%s642_s0 + $0x40] sm:$0xff]  ;;  %v438_v13 = vpack.c.bf16 %v73_v12, %v72_v11  ;;  %v75_v15 = vld [vmem:[%s641_s1 + $0x48] sm:$0xff]  ;;  %v76_v17 = vld [vmem:[%s641_s1 + $0x50] sm:$0xff] }
   0x5   :  { %429 = vmatpush3.bf16.msra.mxu0 %v426_v3  ;;  %466 = vmatpush3.bf16.msra.mxu1 %v426_v3  ;;  %v74_v14 = vld [vmem:[%s641_s1 + $0x40] sm:$0xff]  ;;  %v77_v18 = vld [vmem:[%s641_s1 + $0x58] sm:$0xff]  ;;  %v79_v21 = vld [vmem:[%s641_s1 + $0x68] sm:$0xff] }
   0x6   :  { %431 = vmatprep.subr.bf16.mxu0 %v430_v5  ;;  %459 = vmatprep.subr.bf16.mxu1 %v430_v5  ;;  %v442_v16 = vpack.c.bf16 %v75_v15, %v74_v14  ;;  %v446_v19 = vpack.c.bf16 %v77_v18, %v76_v17  ;;  %v78_v20 = vld [vmem:[%s641_s1 + $0x60] sm:$0xff]  ;;  %v80_v23 = vld [vmem:[%s641_s1 + $0x70] sm:$0xff]  ;;  %v81_v24 = vld [vmem:[%s641_s1 + $0x78] sm:$0xff] }
   0x7   :  { %402 = vmatprep.mubr.f32.mxu0 %v50_v9  ;;  %414 = vmatprep.mubr.f32.mxu1 %v58_v10  ;;  %v450_v22 = vpack.c.bf16 %v79_v21, %v78_v20  ;;  %v454_v25 = vpack.c.bf16 %v81_v24, %v80_v23  ;;  %v51_v26 = vld [vmem:[%s642_s0 + $0x8] sm:$0xff]  ;;  %v52_v28 = vld [vmem:[%s642_s0 + $0x10] sm:$0xff]  ;;  %v53_v30 = vld [vmem:[%s642_s0 + $0x18] sm:$0xff] }
   0x8   :  { %v59_v27 = vld [vmem:[%s642_s0 + $0x48] sm:$0xff]  ;;  %v60_v29 = vld [vmem:[%s642_s0 + $0x50] sm:$0xff]  ;;  %v61_v31 = vld [vmem:[%s642_s0 + $0x58] sm:$0xff] }
   0x9   :  { %433 = vmatpush3.bf16.msra.mxu0 %v430_v5  ;;  %467 = vmatpush3.bf16.msra.mxu1 %v430_v5  ;;  %v54_v32 = vld [vmem:[%s642_s0 + $0x20] sm:$0xff]  ;;  %v55_v34 = vld [vmem:[%s642_s0 + $0x28] sm:$0xff]  ;;  %v56_v36 = vld [vmem:[%s642_s0 + $0x30] sm:$0xff] }
   0xa   :  { %435 = vmatprep.subr.bf16.mxu0 %v434_v8  ;;  %460 = vmatprep.subr.bf16.mxu1 %v434_v8  ;;  %v62_v33 = vld [vmem:[%s642_s0 + $0x60] sm:$0xff]  ;;  %v63_v35 = vld [vmem:[%s642_s0 + $0x68] sm:$0xff]  ;;  %v64_v37 = vld [vmem:[%s642_s0 + $0x70] sm:$0xff] }
   0xb   :  { %v57_v38 = vld [vmem:[%s642_s0 + $0x38] sm:$0xff]  ;;  %v337_v40 = vld [vmem:[%s643_s2] ss:$0 sm:$0xff] }
   0xc   :  { %v65_v39 = vld [vmem:[%s642_s0 + $0x78] sm:$0xff] }
   0xd   :  { %437 = vmatpush3.bf16.msra.mxu0 %v434_v8  ;;  %468 = vmatpush3.bf16.msra.mxu1 %v434_v8 }
   0xe   :  { %439 = vmatprep.subr.bf16.mxu0 %v438_v13  ;;  %461 = vmatprep.subr.bf16.mxu1 %v438_v13 }
  0x11   :  { %441 = vmatpush3.bf16.msra.mxu0 %v438_v13  ;;  %469 = vmatpush3.bf16.msra.mxu1 %v438_v13 }
  0x12   :  { %443 = vmatprep.subr.bf16.mxu0 %v442_v16  ;;  %462 = vmatprep.subr.bf16.mxu1 %v442_v16 }
  0x15   :  { %445 = vmatpush3.bf16.msra.mxu0 %v442_v16  ;;  %470 = vmatpush3.bf16.msra.mxu1 %v442_v16 }
  0x16   :  { %447 = vmatprep.subr.bf16.mxu0 %v446_v19  ;;  %463 = vmatprep.subr.bf16.mxu1 %v446_v19 }
  0x19   :  { %449 = vmatpush3.bf16.msra.mxu0 %v446_v19  ;;  %471 = vmatpush3.bf16.msra.mxu1 %v446_v19 }
  0x1a   :  { %451 = vmatprep.subr.bf16.mxu0 %v450_v22  ;;  %464 = vmatprep.subr.bf16.mxu1 %v450_v22 }
  0x1d   :  { %453 = vmatpush3.bf16.msra.mxu0 %v450_v22  ;;  %472 = vmatpush3.bf16.msra.mxu1 %v450_v22 }
  0x1e   :  { %455 = vmatprep.subr.bf16.mxu0 %v454_v25  ;;  %465 = vmatprep.subr.bf16.mxu1 %v454_v25 }
  0x21   :  { %457 = vmatpush3.bf16.msra.mxu0 %v454_v25  ;;  %473 = vmatpush3.bf16.msra.mxu1 %v454_v25 }
  0x24   :  { %403 = vmatmul.mubr.f32.vlgmr.msra.gmra.mrb[0].mxu0 %v51_v26  ;;  %415 = vmatmul.mubr.f32.vlgmr.msra.gmra.mrb[0].mxu1 %v59_v27 }
  0x25   :  { %405 = vmatprep.mubr.f32.mxu0 %v52_v28  ;;  %417 = vmatprep.mubr.f32.mxu1 %v60_v29 }
  0x28   :  { %406 = vmatmul.mubr.f32.gmra.mrb[2].mxu0 %v53_v30  ;;  %418 = vmatmul.mubr.f32.gmra.mrb[2].mxu1 %v61_v31 }
  0x29   :  { %408 = vmatprep.mubr.f32.mxu0 %v54_v32  ;;  %420 = vmatprep.mubr.f32.mxu1 %v62_v33 }
  0x2c   :  { %409 = vmatmul.mubr.f32.gmra.mrb[4].mxu0 %v55_v34  ;;  %421 = vmatmul.mubr.f32.gmra.mrb[4].mxu1 %v63_v35 }
  0x2d   :  { %411 = vmatprep.mubr.f32.mxu0 %v56_v36  ;;  %423 = vmatprep.mubr.f32.mxu1 %v64_v37 }
  0x30   :  { %412 = vmatmul.mubr.f32.gmra.mrb[6].mxu0 %v57_v38  ;;  %424 = vmatmul.mubr.f32.gmra.mrb[6].mxu1 %v65_v39 }
  0xf7   :  { %v404_v41 = vpop.f32.mrb[0].mxu0  ;;  %v416_v42 = vpop.f32.mrb[0].mxu1 }
  0xf8   :  { %v286_v43 = vadd.f32 %v404_v41, %v337_v40  ;;  %v294_v44 = vadd.f32 %v416_v42, %v337_v40  ;;  %v148_v45 = vpop.f32.mrb[1].mxu0  ;;  %v188_v46 = vpop.f32.mrb[1].mxu1 }
  0xf9   :  { %v285_v47 = vadd.f32 %v337_v40, %v148_v45  ;;  %v293_v48 = vadd.f32 %v337_v40, %v188_v46 }
  0xfa   :  { %v302_v49 = vmax.f32 %v286_v43, 0.0  ;;  %v310_v50 = vmax.f32 %v294_v44, 0.0 }
  0xfb   :  { %v301_v51 = vmax.f32 %v285_v47, 0.0  ;;  %v309_v52 = vmax.f32 %v293_v48, 0.0  ;;  %v407_v53 = vpop.f32.mrb[2].mxu0  ;;  %v419_v54 = vpop.f32.mrb[2].mxu1 }
  0xfc   :  { %318 = vst [vmem:[%s644_s3 + $0x8] sm:$0xff] %v302_v49  ;;  %326 = vst [vmem:[%s644_s3 + $0x48] sm:$0xff] %v310_v50  ;;  %v288_v55 = vadd.f32 %v407_v53, %v337_v40  ;;  %v296_v56 = vadd.f32 %v419_v54, %v337_v40  ;;  %v158_v57 = vpop.f32.mrb[3].mxu0  ;;  %v198_v58 = vpop.f32.mrb[3].mxu1 }
  0xfd   :  { %317 = vst [vmem:[%s644_s3] sm:$0xff] %v301_v51  ;;  %325 = vst [vmem:[%s644_s3 + $0x40] sm:$0xff] %v309_v52  ;;  %v287_v59 = vadd.f32 %v337_v40, %v158_v57  ;;  %v295_v60 = vadd.f32 %v337_v40, %v198_v58 }
  0xfe   :  { %v304_v61 = vmax.f32 %v288_v55, 0.0  ;;  %v312_v62 = vmax.f32 %v296_v56, 0.0 }
  0xff   :  { %v303_v63 = vmax.f32 %v287_v59, 0.0  ;;  %v311_v0 = vmax.f32 %v295_v60, 0.0  ;;  %v410_v1 = vpop.f32.mrb[4].mxu0  ;;  %v422_v2 = vpop.f32.mrb[4].mxu1 }
 0x100   :  { %320 = vst [vmem:[%s644_s3 + $0x18] sm:$0xff] %v304_v61  ;;  %328 = vst [vmem:[%s644_s3 + $0x58] sm:$0xff] %v312_v62  ;;  %v290_v3 = vadd.f32 %v410_v1, %v337_v40  ;;  %v298_v4 = vadd.f32 %v422_v2, %v337_v40  ;;  %v168_v5 = vpop.f32.mrb[5].mxu0  ;;  %v208_v6 = vpop.f32.mrb[5].mxu1 }
 0x101   :  { %319 = vst [vmem:[%s644_s3 + $0x10] sm:$0xff] %v303_v63  ;;  %327 = vst [vmem:[%s644_s3 + $0x50] sm:$0xff] %v311_v0  ;;  %v289_v7 = vadd.f32 %v337_v40, %v168_v5  ;;  %v297_v8 = vadd.f32 %v337_v40, %v208_v6 }
 0x102   :  { %v306_v9 = vmax.f32 %v290_v3, 0.0  ;;  %v314_v10 = vmax.f32 %v298_v4, 0.0 }
 0x103   :  { %v305_v11 = vmax.f32 %v289_v7, 0.0  ;;  %v313_v12 = vmax.f32 %v297_v8, 0.0  ;;  %v413_v13 = vpop.f32.mrb[6].mxu0  ;;  %v425_v14 = vpop.f32.mrb[6].mxu1 }
 0x104   :  { %322 = vst [vmem:[%s644_s3 + $0x28] sm:$0xff] %v306_v9  ;;  %330 = vst [vmem:[%s644_s3 + $0x68] sm:$0xff] %v314_v10  ;;  %v292_v15 = vadd.f32 %v413_v13, %v337_v40  ;;  %v300_v16 = vadd.f32 %v425_v14, %v337_v40  ;;  %v178_v17 = vpop.f32.mrb[7].mxu0  ;;  %v218_v18 = vpop.f32.mrb[7].mxu1 }
 0x105   :  { %321 = vst [vmem:[%s644_s3 + $0x20] sm:$0xff] %v305_v11  ;;  %329 = vst [vmem:[%s644_s3 + $0x60] sm:$0xff] %v313_v12  ;;  %v291_v19 = vadd.f32 %v337_v40, %v178_v17  ;;  %v299_v20 = vadd.f32 %v337_v40, %v218_v18 }
 0x106   :  { %v308_v21 = vmax.f32 %v292_v15, 0.0  ;;  %v316_v22 = vmax.f32 %v300_v16, 0.0 }
 0x107   :  { %v307_v23 = vmax.f32 %v291_v19, 0.0  ;;  %v315_v24 = vmax.f32 %v299_v20, 0.0 }
 0x108   :  { %324 = vst [vmem:[%s644_s3 + $0x38] sm:$0xff] %v308_v21  ;;  %332 = vst [vmem:[%s644_s3 + $0x78] sm:$0xff] %v316_v22 }
 0x109   :  { %323 = vst [vmem:[%s644_s3 + $0x30] sm:$0xff] %v307_v23  ;;  %331 = vst [vmem:[%s644_s3 + $0x70] sm:$0xff] %v315_v24 }

// kernel: conv_forward.7
= control target key start
LH: loop header
LB: loop body
LE: loop exit
PB: predicated region body
PF: predicated region fallthrough
CT: control target
= control target key end

     0   :  { %s742_s1 = inlined_call_operand.vmem [shape: f32[512,128], index: 1, kind: input, shape index: {}]   ;;  %s743_s0 = inlined_call_operand.vmem [shape: f32[32,512], index: 0, kind: input, shape index: {}]   ;;  %s744_s2 = inlined_call_operand.vmem [shape: f32[1,128], index: 2, kind: input, shape index: {}]   ;;  %s745_s3 = inlined_call_operand.vmem [shape: f32[32,128], index: 3, kind: output, shape index: {}]  }
   0x1   :  { %v58_v0 = vld [vmem:[%s742_s1 + $0x80] sm:$0xff]  ;;  %v59_v1 = vld [vmem:[%s742_s1 + $0x88] sm:$0xff]  ;;  %v60_v11 = vld [vmem:[%s742_s1 + $0x90] sm:$0xff] }
   0x2   :  { %v90_v2 = vld [vmem:[%s742_s1 + $0x180] sm:$0xff]  ;;  %v403_v3 = vpack.c.bf16 %v59_v1, %v58_v0  ;;  %v91_v4 = vld [vmem:[%s742_s1 + $0x188] sm:$0xff]  ;;  %v61_v13 = vld [vmem:[%s742_s1 + $0x98] sm:$0xff] }
   0x3   :  { %v42_v5 = vld [vmem:[%s742_s1] sm:$0xff]  ;;  %v43_v6 = vld [vmem:[%s742_s1 + $0x8] sm:$0xff]  ;;  %v435_v7 = vpack.c.bf16 %v91_v4, %v90_v2  ;;  %v92_v14 = vld [vmem:[%s742_s1 + $0x190] sm:$0xff]  ;;  %v407_v16 = vpack.c.bf16 %v61_v13, %v60_v11 }
   0x4   :  { %v405_v8 = vpack.c.bf16 %v43_v6, %v42_v5  ;;  %v74_v9 = vld [vmem:[%s742_s1 + $0x100] sm:$0xff]  ;;  %v75_v10 = vld [vmem:[%s742_s1 + $0x108] sm:$0xff]  ;;  %404 = vmatprep.subr.bf16.mxu0 %v403_v3  ;;  %v93_v15 = vld [vmem:[%s742_s1 + $0x198] sm:$0xff] }
   0x5   :  { %v437_v12 = vpack.c.bf16 %v75_v10, %v74_v9  ;;  %436 = vmatprep.subr.bf16.mxu1 %v435_v7  ;;  %v439_v17 = vpack.c.bf16 %v93_v15, %v92_v14  ;;  %v44_v18 = vld [vmem:[%s742_s1 + $0x10] sm:$0xff]  ;;  %v45_v19 = vld [vmem:[%s742_s1 + $0x18] sm:$0xff]  ;;  %v62_v23 = vld [vmem:[%s742_s1 + $0xa0] sm:$0xff] }
   0x6   :  { %406 = vmatpush3.bf16.msra.mxu0 %v405_v8  ;;  %v76_v20 = vld [vmem:[%s742_s1 + $0x110] sm:$0xff]  ;;  %v409_v21 = vpack.c.bf16 %v45_v19, %v44_v18  ;;  %v77_v22 = vld [vmem:[%s742_s1 + $0x118] sm:$0xff]  ;;  %v63_v24 = vld [vmem:[%s742_s1 + $0xa8] sm:$0xff] }
   0x7   :  { %438 = vmatpush3.bf16.msra.mxu1 %v437_v12  ;;  %408 = vmatprep.subr.bf16.mxu0 %v407_v16  ;;  %v441_v25 = vpack.c.bf16 %v77_v22, %v76_v20  ;;  %v411_v26 = vpack.c.bf16 %v63_v24, %v62_v23  ;;  %v94_v27 = vld [vmem:[%s742_s1 + $0x1a0] sm:$0xff]  ;;  %v95_v28 = vld [vmem:[%s742_s1 + $0x1a8] sm:$0xff]  ;;  %v64_v35 = vld [vmem:[%s742_s1 + $0xb0] sm:$0xff] }
   0x8   :  { %440 = vmatprep.subr.bf16.mxu1 %v439_v17  ;;  %v46_v29 = vld [vmem:[%s742_s1 + $0x20] sm:$0xff]  ;;  %v443_v30 = vpack.c.bf16 %v95_v28, %v94_v27  ;;  %v47_v31 = vld [vmem:[%s742_s1 + $0x28] sm:$0xff]  ;;  %v65_v36 = vld [vmem:[%s742_s1 + $0xb8] sm:$0xff] }
   0x9   :  { %v78_v32 = vld [vmem:[%s742_s1 + $0x120] sm:$0xff]  ;;  %v79_v33 = vld [vmem:[%s742_s1 + $0x128] sm:$0xff]  ;;  %v413_v34 = vpack.c.bf16 %v47_v31, %v46_v29  ;;  %v96_v37 = vld [vmem:[%s742_s1 + $0x1b0] sm:$0xff]  ;;  %v415_v39 = vpack.c.bf16 %v65_v36, %v64_v35 }
   0xa   :  { %410 = vmatpush3.bf16.msra.mxu0 %v409_v21  ;;  %v445_v38 = vpack.c.bf16 %v79_v33, %v78_v32  ;;  %v97_v40 = vld [vmem:[%s742_s1 + $0x1b8] sm:$0xff]  ;;  %v48_v41 = vld [vmem:[%s742_s1 + $0x30] sm:$0xff]  ;;  %v66_v46 = vld [vmem:[%s742_s1 + $0xc0] sm:$0xff] }
   0xb   :  { %442 = vmatpush3.bf16.msra.mxu1 %v441_v25  ;;  %412 = vmatprep.subr.bf16.mxu0 %v411_v26  ;;  %v49_v42 = vld [vmem:[%s742_s1 + $0x38] sm:$0xff]  ;;  %v447_v43 = vpack.c.bf16 %v97_v40, %v96_v37  ;;  %v80_v44 = vld [vmem:[%s742_s1 + $0x130] sm:$0xff]  ;;  %v67_v47 = vld [vmem:[%s742_s1 + $0xc8] sm:$0xff] }
   0xc   :  { %444 = vmatprep.subr.bf16.mxu1 %v443_v30  ;;  %v81_v45 = vld [vmem:[%s742_s1 + $0x138] sm:$0xff]  ;;  %v98_v48 = vld [vmem:[%s742_s1 + $0x1c0] sm:$0xff]  ;;  %v99_v49 = vld [vmem:[%s742_s1 + $0x1c8] sm:$0xff]  ;;  %v417_v50 = vpack.c.bf16 %v49_v42, %v48_v41  ;;  %v419_v52 = vpack.c.bf16 %v67_v47, %v66_v46 }
   0xd   :  { %v449_v51 = vpack.c.bf16 %v81_v45, %v80_v44  ;;  %v50_v53 = vld [vmem:[%s742_s1 + $0x40] sm:$0xff]  ;;  %v51_v54 = vld [vmem:[%s742_s1 + $0x48] sm:$0xff]  ;;  %v451_v56 = vpack.c.bf16 %v99_v49, %v98_v48  ;;  %v68_v58 = vld [vmem:[%s742_s1 + $0xd0] sm:$0xff] }
   0xe   :  { %414 = vmatpush3.bf16.msra.mxu0 %v413_v34  ;;  %v82_v55 = vld [vmem:[%s742_s1 + $0x140] sm:$0xff]  ;;  %v83_v57 = vld [vmem:[%s742_s1 + $0x148] sm:$0xff]  ;;  %v69_v59 = vld [vmem:[%s742_s1 + $0xd8] sm:$0xff]  ;;  %v421_v62 = vpack.c.bf16 %v51_v54, %v50_v53 }
   0xf   :  { %446 = vmatpush3.bf16.msra.mxu1 %v445_v38  ;;  %416 = vmatprep.subr.bf16.mxu0 %v415_v39  ;;  %v100_v60 = vld [vmem:[%s742_s1 + $0x1d0] sm:$0xff]  ;;  %v101_v61 = vld [vmem:[%s742_s1 + $0x1d8] sm:$0xff]  ;;  %v453_v63 = vpack.c.bf16 %v83_v57, %v82_v55  ;;  %v423_v0 = vpack.c.bf16 %v69_v59, %v68_v58  ;;  %v70_v6 = vld [vmem:[%s742_s1 + $0xe0] sm:$0xff] }
  0x10   :  { %448 = vmatprep.subr.bf16.mxu1 %v447_v43  ;;  %v52_v1 = vld [vmem:[%s742_s1 + $0x50] sm:$0xff]  ;;  %v53_v2 = vld [vmem:[%s742_s1 + $0x58] sm:$0xff]  ;;  %v455_v4 = vpack.c.bf16 %v101_v61, %v100_v60  ;;  %v71_v7 = vld [vmem:[%s742_s1 + $0xe8] sm:$0xff] }
  0x11   :  { %v84_v3 = vld [vmem:[%s742_s1 + $0x150] sm:$0xff]  ;;  %v85_v5 = vld [vmem:[%s742_s1 + $0x158] sm:$0xff]  ;;  %v102_v8 = vld [vmem:[%s742_s1 + $0x1e0] sm:$0xff]  ;;  %v425_v10 = vpack.c.bf16 %v53_v2, %v52_v1  ;;  %v427_v14 = vpack.c.bf16 %v71_v7, %v70_v6 }
  0x12   :  { %418 = vmatpush3.bf16.msra.mxu0 %v417_v50  ;;  %v103_v9 = vld [vmem:[%s742_s1 + $0x1e8] sm:$0xff]  ;;  %v54_v11 = vld [vmem:[%s742_s1 + $0x60] sm:$0xff]  ;;  %v457_v13 = vpack.c.bf16 %v85_v5, %v84_v3  ;;  %v29_v17 = vld [vmem:[%s743_s0 + $0x18] sm:$0xff] }
  0x13   :  { %450 = vmatpush3.bf16.msra.mxu1 %v449_v51  ;;  %420 = vmatprep.subr.bf16.mxu0 %v419_v52  ;;  %v55_v12 = vld [vmem:[%s742_s1 + $0x68] sm:$0xff]  ;;  %v86_v15 = vld [vmem:[%s742_s1 + $0x160] sm:$0xff]  ;;  %v459_v18 = vpack.c.bf16 %v103_v9, %v102_v8  ;;  %v72_v20 = vld [vmem:[%s742_s1 + $0xf0] sm:$0xff] }
  0x14   :  { %452 = vmatprep.subr.bf16.mxu1 %v451_v56  ;;  %v27_v16 = vld [vmem:[%s743_s0 + $0x8] sm:$0xff]  ;;  %v73_v21 = vld [vmem:[%s742_s1 + $0xf8] sm:$0xff]  ;;  %v104_v22 = vld [vmem:[%s742_s1 + $0x1f0] sm:$0xff]  ;;  %255 = vmatprep.mubr.f32.mxu1 %v29_v17  ;;  %v429_v24 = vpack.c.bf16 %v55_v12, %v54_v11 }
  0x15   :  { %v87_v19 = vld [vmem:[%s742_s1 + $0x168] sm:$0xff]  ;;  %170 = vmatprep.mubr.f32.mxu0 %v27_v16  ;;  %v105_v23 = vld [vmem:[%s742_s1 + $0x1f8] sm:$0xff]  ;;  %v431_v26 = vpack.c.bf16 %v73_v21, %v72_v20  ;;  %v56_v27 = vld [vmem:[%s742_s1 + $0x70] sm:$0xff] }
  0x16   :  { %422 = vmatpush3.bf16.msra.mxu0 %v421_v62  ;;  %v461_v25 = vpack.c.bf16 %v87_v19, %v86_v15  ;;  %v57_v28 = vld [vmem:[%s742_s1 + $0x78] sm:$0xff]  ;;  %v463_v29 = vpack.c.bf16 %v105_v23, %v104_v22  ;;  %v88_v30 = vld [vmem:[%s742_s1 + $0x170] sm:$0xff]  ;;  %v26_v34 = vld [vmem:[%s743_s0] sm:$0xff] }
  0x17   :  { %454 = vmatpush3.bf16.msra.mxu1 %v453_v63  ;;  %424 = vmatprep.subr.bf16.mxu0 %v423_v0  ;;  %v89_v31 = vld [vmem:[%s742_s1 + $0x178] sm:$0xff]  ;;  %v433_v32 = vpack.c.bf16 %v57_v28, %v56_v27  ;;  %v28_v35 = vld [vmem:[%s743_s0 + $0x10] sm:$0xff]  ;;  %v31_v36 = vld [vmem:[%s743_s0 + $0x28] sm:$0xff] }
  0x18   :  { %456 = vmatprep.subr.bf16.mxu1 %v455_v4  ;;  %v465_v33 = vpack.c.bf16 %v89_v31, %v88_v30  ;;  %v33_v37 = vld [vmem:[%s743_s0 + $0x38] sm:$0xff]  ;;  %v30_v38 = vld [vmem:[%s743_s0 + $0x20] sm:$0xff]  ;;  %v32_v39 = vld [vmem:[%s743_s0 + $0x30] sm:$0xff] }
  0x19   :  { %v35_v40 = vld [vmem:[%s743_s0 + $0x48] sm:$0xff]  ;;  %v37_v41 = vld [vmem:[%s743_s0 + $0x58] sm:$0xff]  ;;  %v34_v42 = vld [vmem:[%s743_s0 + $0x40] sm:$0xff] }
  0x1a   :  { %426 = vmatpush3.bf16.msra.mxu0 %v425_v10  ;;  %v36_v43 = vld [vmem:[%s743_s0 + $0x50] sm:$0xff]  ;;  %v39_v44 = vld [vmem:[%s743_s0 + $0x68] sm:$0xff]  ;;  %v41_v45 = vld [vmem:[%s743_s0 + $0x78] sm:$0xff] }
  0x1b   :  { %458 = vmatpush3.bf16.msra.mxu1 %v457_v13  ;;  %428 = vmatprep.subr.bf16.mxu0 %v427_v14  ;;  %v38_v46 = vld [vmem:[%s743_s0 + $0x60] sm:$0xff]  ;;  %v40_v47 = vld [vmem:[%s743_s0 + $0x70] sm:$0xff] }
  0x1c   :  { %460 = vmatprep.subr.bf16.mxu1 %v459_v18  ;;  %v314_v54 = vld [vmem:[%s744_s2] ss:$0 sm:$0xff] }
  0x1e   :  { %430 = vmatpush3.bf16.msra.mxu0 %v429_v24 }
  0x1f   :  { %462 = vmatpush3.bf16.msra.mxu1 %v461_v25  ;;  %432 = vmatprep.subr.bf16.mxu0 %v431_v26 }
  0x20   :  { %464 = vmatprep.subr.bf16.mxu1 %v463_v29 }
  0x22   :  { %434 = vmatpush3.bf16.msra.mxu0 %v433_v32 }
  0x23   :  { %466 = vmatpush3.bf16.msra.mxu1 %v465_v33 }
  0x25   :  { %171 = vmatmul.mubr.f32.vlgmr.msra.gmra.mrb[0].mxu0 %v26_v34 }
  0x26   :  { %256 = vmatmul.mubr.f32.vlgmr.msra.gmra.mrb[0].mxu1 %v28_v35  ;;  %175 = vmatprep.mubr.f32.mxu0 %v31_v36 }
  0x27   :  { %260 = vmatprep.mubr.f32.mxu1 %v33_v37 }
  0x29   :  { %176 = vmatmul.mubr.f32.gmra.mrb[2].mxu0 %v30_v38 }
  0x2a   :  { %261 = vmatmul.mubr.f32.gmra.mrb[2].mxu1 %v32_v39  ;;  %180 = vmatprep.mubr.f32.mxu0 %v35_v40 }
  0x2b   :  { %265 = vmatprep.mubr.f32.mxu1 %v37_v41 }
  0x2d   :  { %181 = vmatmul.mubr.f32.gmra.mrb[4].mxu0 %v34_v42 }
  0x2e   :  { %266 = vmatmul.mubr.f32.gmra.mrb[4].mxu1 %v36_v43  ;;  %185 = vmatprep.mubr.f32.mxu0 %v39_v44 }
  0x2f   :  { %270 = vmatprep.mubr.f32.mxu1 %v41_v45 }
  0x31   :  { %186 = vmatmul.mubr.f32.gmra.mrb[6].mxu0 %v38_v46 }
  0x32   :  { %271 = vmatmul.mubr.f32.gmra.mrb[6].mxu1 %v40_v47 }
  0xf8   :  { %v347_v48 = vpop.f32.mrb[0].mxu0 }
  0xf9   :  { %v391_v49 = vpop.f32.mrb[0].mxu1  ;;  %v348_v50 = vpop.f32.mrb[1].mxu0 }
  0xfa   :  { %v349_v51 = vadd.f32 %v348_v50, %v347_v48  ;;  %v392_v52 = vpop.f32.mrb[1].mxu1 }
  0xfb   :  { %v393_v53 = vadd.f32 %v392_v52, %v391_v49 }
  0xfc   :  { %v350_v55 = vpop.f32.mrb[2].mxu0 }
  0xfd   :  { %v258_v56 = vadd.f32 %v393_v53, %v349_v51  ;;  %v394_v57 = vpop.f32.mrb[2].mxu1  ;;  %v351_v58 = vpop.f32.mrb[3].mxu0 }
  0xfe   :  { %v352_v59 = vadd.f32 %v351_v58, %v350_v55  ;;  %v395_v60 = vpop.f32.mrb[3].mxu1 }
  0xff   :  { %v298_v61 = vadd.f32 %v314_v54, %v258_v56  ;;  %v396_v62 = vadd.f32 %v395_v60, %v394_v57 }
 0x100   :  { %v353_v63 = vpop.f32.mrb[4].mxu0 }
 0x101   :  { %v302_v0 = vmax.f32 %v298_v61, 0.0  ;;  %v263_v1 = vadd.f32 %v396_v62, %v352_v59  ;;  %v397_v2 = vpop.f32.mrb[4].mxu1  ;;  %v354_v3 = vpop.f32.mrb[5].mxu0 }
 0x102   :  { %v355_v4 = vadd.f32 %v354_v3, %v353_v63  ;;  %v398_v5 = vpop.f32.mrb[5].mxu1 }
 0x103   :  { %306 = vst [vmem:[%s745_s3] sm:$0xff] %v302_v0  ;;  %v299_v6 = vadd.f32 %v314_v54, %v263_v1  ;;  %v399_v7 = vadd.f32 %v398_v5, %v397_v2 }
 0x104   :  { %v356_v8 = vpop.f32.mrb[6].mxu0 }
 0x105   :  { %v303_v9 = vmax.f32 %v299_v6, 0.0  ;;  %v268_v10 = vadd.f32 %v399_v7, %v355_v4  ;;  %v400_v11 = vpop.f32.mrb[6].mxu1  ;;  %v357_v12 = vpop.f32.mrb[7].mxu0 }
 0x106   :  { %v358_v13 = vadd.f32 %v357_v12, %v356_v8  ;;  %v401_v14 = vpop.f32.mrb[7].mxu1 }
 0x107   :  { %307 = vst [vmem:[%s745_s3 + $0x8] sm:$0xff] %v303_v9  ;;  %v300_v15 = vadd.f32 %v314_v54, %v268_v10  ;;  %v402_v16 = vadd.f32 %v401_v14, %v400_v11 }
 0x109   :  { %v304_v17 = vmax.f32 %v300_v15, 0.0  ;;  %v273_v18 = vadd.f32 %v402_v16, %v358_v13 }
 0x10b   :  { %308 = vst [vmem:[%s745_s3 + $0x10] sm:$0xff] %v304_v17  ;;  %v301_v19 = vadd.f32 %v314_v54, %v273_v18 }
 0x10d   :  { %v305_v20 = vmax.f32 %v301_v19, 0.0 }
 0x10f   :  { %309 = vst [vmem:[%s745_s3 + $0x18] sm:$0xff] %v305_v20 }

// kernel: conv_forward.8
= control target key start
LH: loop header
LB: loop body
LE: loop exit
PB: predicated region body
PF: predicated region fallthrough
CT: control target
= control target key end

     0   :  { %s613_s1 = inlined_call_operand.vmem [shape: f32[512,128], index: 1, kind: input, shape index: {}]   ;;  %s614_s0 = inlined_call_operand.vmem [shape: f32[8,512], index: 0, kind: input, shape index: {}]   ;;  %s615_s2 = inlined_call_operand.vmem [shape: f32[1,128], index: 2, kind: input, shape index: {}]   ;;  %s616_s3 = inlined_call_operand.vmem [shape: f32[8,128], index: 3, kind: output, shape index: {}]  }
   0x1   :  { %v40_v0 = vld [vmem:[%s613_s1 + $0x80] sm:$0xff]  ;;  %v41_v1 = vld [vmem:[%s613_s1 + $0x88] sm:$0xff]  ;;  %v42_v11 = vld [vmem:[%s613_s1 + $0x90] sm:$0xff] }
   0x2   :  { %v72_v2 = vld [vmem:[%s613_s1 + $0x180] sm:$0xff]  ;;  %v319_v3 = vpack.c.bf16 %v41_v1, %v40_v0  ;;  %v73_v4 = vld [vmem:[%s613_s1 + $0x188] sm:$0xff]  ;;  %v43_v13 = vld [vmem:[%s613_s1 + $0x98] sm:$0xff] }
   0x3   :  { %v24_v5 = vld [vmem:[%s613_s1] sm:$0xff]  ;;  %v25_v6 = vld [vmem:[%s613_s1 + $0x8] sm:$0xff]  ;;  %v351_v7 = vpack.c.bf16 %v73_v4, %v72_v2  ;;  %v74_v14 = vld [vmem:[%s613_s1 + $0x190] sm:$0xff]  ;;  %v323_v16 = vpack.c.bf16 %v43_v13, %v42_v11 }
   0x4   :  { %v321_v8 = vpack.c.bf16 %v25_v6, %v24_v5  ;;  %v56_v9 = vld [vmem:[%s613_s1 + $0x100] sm:$0xff]  ;;  %v57_v10 = vld [vmem:[%s613_s1 + $0x108] sm:$0xff]  ;;  %320 = vmatprep.subr.bf16.mxu0 %v319_v3  ;;  %v75_v15 = vld [vmem:[%s613_s1 + $0x198] sm:$0xff] }
   0x5   :  { %v353_v12 = vpack.c.bf16 %v57_v10, %v56_v9  ;;  %352 = vmatprep.subr.bf16.mxu1 %v351_v7  ;;  %v355_v17 = vpack.c.bf16 %v75_v15, %v74_v14  ;;  %v26_v18 = vld [vmem:[%s613_s1 + $0x10] sm:$0xff]  ;;  %v27_v19 = vld [vmem:[%s613_s1 + $0x18] sm:$0xff]  ;;  %v44_v23 = vld [vmem:[%s613_s1 + $0xa0] sm:$0xff] }
   0x6   :  { %322 = vmatpush3.bf16.msra.mxu0 %v321_v8  ;;  %v58_v20 = vld [vmem:[%s613_s1 + $0x110] sm:$0xff]  ;;  %v325_v21 = vpack.c.bf16 %v27_v19, %v26_v18  ;;  %v59_v22 = vld [vmem:[%s613_s1 + $0x118] sm:$0xff]  ;;  %v45_v24 = vld [vmem:[%s613_s1 + $0xa8] sm:$0xff] }
   0x7   :  { %354 = vmatpush3.bf16.msra.mxu1 %v353_v12  ;;  %324 = vmatprep.subr.bf16.mxu0 %v323_v16  ;;  %v357_v25 = vpack.c.bf16 %v59_v22, %v58_v20  ;;  %v327_v26 = vpack.c.bf16 %v45_v24, %v44_v23  ;;  %v76_v27 = vld [vmem:[%s613_s1 + $0x1a0] sm:$0xff]  ;;  %v77_v28 = vld [vmem:[%s613_s1 + $0x1a8] sm:$0xff]  ;;  %v46_v35 = vld [vmem:[%s613_s1 + $0xb0] sm:$0xff] }
   0x8   :  { %356 = vmatprep.subr.bf16.mxu1 %v355_v17  ;;  %v28_v29 = vld [vmem:[%s613_s1 + $0x20] sm:$0xff]  ;;  %v359_v30 = vpack.c.bf16 %v77_v28, %v76_v27  ;;  %v29_v31 = vld [vmem:[%s613_s1 + $0x28] sm:$0xff]  ;;  %v47_v36 = vld [vmem:[%s613_s1 + $0xb8] sm:$0xff] }
   0x9   :  { %v60_v32 = vld [vmem:[%s613_s1 + $0x120] sm:$0xff]  ;;  %v61_v33 = vld [vmem:[%s613_s1 + $0x128] sm:$0xff]  ;;  %v329_v34 = vpack.c.bf16 %v29_v31, %v28_v29  ;;  %v78_v37 = vld [vmem:[%s613_s1 + $0x1b0] sm:$0xff]  ;;  %v331_v39 = vpack.c.bf16 %v47_v36, %v46_v35 }
   0xa   :  { %326 = vmatpush3.bf16.msra.mxu0 %v325_v21  ;;  %v361_v38 = vpack.c.bf16 %v61_v33, %v60_v32  ;;  %v79_v40 = vld [vmem:[%s613_s1 + $0x1b8] sm:$0xff]  ;;  %v30_v41 = vld [vmem:[%s613_s1 + $0x30] sm:$0xff]  ;;  %v48_v46 = vld [vmem:[%s613_s1 + $0xc0] sm:$0xff] }
   0xb   :  { %358 = vmatpush3.bf16.msra.mxu1 %v357_v25  ;;  %328 = vmatprep.subr.bf16.mxu0 %v327_v26  ;;  %v31_v42 = vld [vmem:[%s613_s1 + $0x38] sm:$0xff]  ;;  %v363_v43 = vpack.c.bf16 %v79_v40, %v78_v37  ;;  %v62_v44 = vld [vmem:[%s613_s1 + $0x130] sm:$0xff]  ;;  %v49_v47 = vld [vmem:[%s613_s1 + $0xc8] sm:$0xff] }
   0xc   :  { %360 = vmatprep.subr.bf16.mxu1 %v359_v30  ;;  %v63_v45 = vld [vmem:[%s613_s1 + $0x138] sm:$0xff]  ;;  %v80_v48 = vld [vmem:[%s613_s1 + $0x1c0] sm:$0xff]  ;;  %v81_v49 = vld [vmem:[%s613_s1 + $0x1c8] sm:$0xff]  ;;  %v333_v50 = vpack.c.bf16 %v31_v42, %v30_v41  ;;  %v335_v52 = vpack.c.bf16 %v49_v47, %v48_v46 }
   0xd   :  { %v365_v51 = vpack.c.bf16 %v63_v45, %v62_v44  ;;  %v32_v53 = vld [vmem:[%s613_s1 + $0x40] sm:$0xff]  ;;  %v33_v54 = vld [vmem:[%s613_s1 + $0x48] sm:$0xff]  ;;  %v367_v56 = vpack.c.bf16 %v81_v49, %v80_v48  ;;  %v50_v58 = vld [vmem:[%s613_s1 + $0xd0] sm:$0xff] }
   0xe   :  { %330 = vmatpush3.bf16.msra.mxu0 %v329_v34  ;;  %v64_v55 = vld [vmem:[%s613_s1 + $0x140] sm:$0xff]  ;;  %v65_v57 = vld [vmem:[%s613_s1 + $0x148] sm:$0xff]  ;;  %v51_v59 = vld [vmem:[%s613_s1 + $0xd8] sm:$0xff]  ;;  %v337_v62 = vpack.c.bf16 %v33_v54, %v32_v53 }
   0xf   :  { %362 = vmatpush3.bf16.msra.mxu1 %v361_v38  ;;  %332 = vmatprep.subr.bf16.mxu0 %v331_v39  ;;  %v82_v60 = vld [vmem:[%s613_s1 + $0x1d0] sm:$0xff]  ;;  %v83_v61 = vld [vmem:[%s613_s1 + $0x1d8] sm:$0xff]  ;;  %v369_v63 = vpack.c.bf16 %v65_v57, %v64_v55  ;;  %v339_v0 = vpack.c.bf16 %v51_v59, %v50_v58  ;;  %v52_v6 = vld [vmem:[%s613_s1 + $0xe0] sm:$0xff] }
  0x10   :  { %364 = vmatprep.subr.bf16.mxu1 %v363_v43  ;;  %v34_v1 = vld [vmem:[%s613_s1 + $0x50] sm:$0xff]  ;;  %v35_v2 = vld [vmem:[%s613_s1 + $0x58] sm:$0xff]  ;;  %v371_v4 = vpack.c.bf16 %v83_v61, %v82_v60  ;;  %v53_v7 = vld [vmem:[%s613_s1 + $0xe8] sm:$0xff] }
  0x11   :  { %v66_v3 = vld [vmem:[%s613_s1 + $0x150] sm:$0xff]  ;;  %v67_v5 = vld [vmem:[%s613_s1 + $0x158] sm:$0xff]  ;;  %v84_v8 = vld [vmem:[%s613_s1 + $0x1e0] sm:$0xff]  ;;  %v341_v10 = vpack.c.bf16 %v35_v2, %v34_v1  ;;  %v343_v14 = vpack.c.bf16 %v53_v7, %v52_v6 }
  0x12   :  { %334 = vmatpush3.bf16.msra.mxu0 %v333_v50  ;;  %v85_v9 = vld [vmem:[%s613_s1 + $0x1e8] sm:$0xff]  ;;  %v36_v11 = vld [vmem:[%s613_s1 + $0x60] sm:$0xff]  ;;  %v373_v13 = vpack.c.bf16 %v67_v5, %v66_v3  ;;  %v23_v17 = vld [vmem:[%s614_s0 + $0x18] sm:$0xff] }
  0x13   :  { %366 = vmatpush3.bf16.msra.mxu1 %v365_v51  ;;  %336 = vmatprep.subr.bf16.mxu0 %v335_v52  ;;  %v37_v12 = vld [vmem:[%s613_s1 + $0x68] sm:$0xff]  ;;  %v68_v15 = vld [vmem:[%s613_s1 + $0x160] sm:$0xff]  ;;  %v375_v18 = vpack.c.bf16 %v85_v9, %v84_v8  ;;  %v54_v20 = vld [vmem:[%s613_s1 + $0xf0] sm:$0xff] }
  0x14   :  { %368 = vmatprep.subr.bf16.mxu1 %v367_v56  ;;  %v21_v16 = vld [vmem:[%s614_s0 + $0x8] sm:$0xff]  ;;  %v55_v21 = vld [vmem:[%s613_s1 + $0xf8] sm:$0xff]  ;;  %v86_v22 = vld [vmem:[%s613_s1 + $0x1f0] sm:$0xff]  ;;  %222 = vmatprep.mubr.f32.mxu1 %v23_v17  ;;  %v345_v24 = vpack.c.bf16 %v37_v12, %v36_v11 }
  0x15   :  { %v69_v19 = vld [vmem:[%s613_s1 + $0x168] sm:$0xff]  ;;  %152 = vmatprep.mubr.f32.mxu0 %v21_v16  ;;  %v87_v23 = vld [vmem:[%s613_s1 + $0x1f8] sm:$0xff]  ;;  %v347_v26 = vpack.c.bf16 %v55_v21, %v54_v20  ;;  %v38_v27 = vld [vmem:[%s613_s1 + $0x70] sm:$0xff] }
  0x16   :  { %338 = vmatpush3.bf16.msra.mxu0 %v337_v62  ;;  %v377_v25 = vpack.c.bf16 %v69_v19, %v68_v15  ;;  %v39_v28 = vld [vmem:[%s613_s1 + $0x78] sm:$0xff]  ;;  %v379_v29 = vpack.c.bf16 %v87_v23, %v86_v22  ;;  %v70_v30 = vld [vmem:[%s613_s1 + $0x170] sm:$0xff]  ;;  %v20_v34 = vld [vmem:[%s614_s0] sm:$0xff] }
  0x17   :  { %370 = vmatpush3.bf16.msra.mxu1 %v369_v63  ;;  %340 = vmatprep.subr.bf16.mxu0 %v339_v0  ;;  %v71_v31 = vld [vmem:[%s613_s1 + $0x178] sm:$0xff]  ;;  %v349_v32 = vpack.c.bf16 %v39_v28, %v38_v27  ;;  %v22_v35 = vld [vmem:[%s614_s0 + $0x10] sm:$0xff]  ;;  %v248_v42 = vld [vmem:[%s615_s2] ss:$0 sm:$0xff] }
  0x18   :  { %372 = vmatprep.subr.bf16.mxu1 %v371_v4  ;;  %v381_v33 = vpack.c.bf16 %v71_v31, %v70_v30 }
  0x1a   :  { %342 = vmatpush3.bf16.msra.mxu0 %v341_v10 }
  0x1b   :  { %374 = vmatpush3.bf16.msra.mxu1 %v373_v13  ;;  %344 = vmatprep.subr.bf16.mxu0 %v343_v14 }
  0x1c   :  { %376 = vmatprep.subr.bf16.mxu1 %v375_v18 }
  0x1e   :  { %346 = vmatpush3.bf16.msra.mxu0 %v345_v24 }
  0x1f   :  { %378 = vmatpush3.bf16.msra.mxu1 %v377_v25  ;;  %348 = vmatprep.subr.bf16.mxu0 %v347_v26 }
  0x20   :  { %380 = vmatprep.subr.bf16.mxu1 %v379_v29 }
  0x22   :  { %350 = vmatpush3.bf16.msra.mxu0 %v349_v32 }
  0x23   :  { %382 = vmatpush3.bf16.msra.mxu1 %v381_v33 }
  0x25   :  { %153 = vmatmul.mubr.f32.vlgmr.msra.gmra.mrb[0].mxu0 %v20_v34 }
  0x26   :  { %223 = vmatmul.mubr.f32.vlgmr.msra.gmra.mrb[0].mxu1 %v22_v35 }
  0xf8   :  { %v281_v36 = vpop.f32.mrb[0].mxu0 }
  0xf9   :  { %v316_v37 = vpop.f32.mrb[0].mxu1  ;;  %v282_v38 = vpop.f32.mrb[1].mxu0 }
  0xfa   :  { %v283_v39 = vadd.f32 %v282_v38, %v281_v36  ;;  %v317_v40 = vpop.f32.mrb[1].mxu1 }
  0xfb   :  { %v318_v41 = vadd.f32 %v317_v40, %v316_v37 }
  0xfd   :  { %v225_v43 = vadd.f32 %v318_v41, %v283_v39 }
  0xff   :  { %v241_v44 = vadd.f32 %v248_v42, %v225_v43 }
 0x101   :  { %v242_v45 = vmax.f32 %v241_v44, 0.0 }
 0x103   :  { %243 = vst [vmem:[%s616_s3] sm:$0xff] %v242_v45 }

// kernel: conv_forward.9
= control target key start
LH: loop header
LB: loop body
LE: loop exit
PB: predicated region body
PF: predicated region fallthrough
CT: control target
= control target key end

     0   :  { %s814_s12 = smov 0   ;;  %s816_s13 = smov 0   ;;  %s931_s0 = inlined_call_operand.vmem [shape: f32[8,1024], index: 0, kind: input, shape index: {}]   ;;  %s932_s1 = inlined_call_operand.vmem [shape: f32[1024,128], index: 1, kind: input, shape index: {}]   ;;  %s933_s2 = inlined_call_operand.vmem [shape: f32[1,128], index: 2, kind: input, shape index: {}]   ;;  %s934_s3 = inlined_call_operand.vmem [shape: f32[8,128], index: 3, kind: output, shape index: {}]  }
   0x1   :  { %s818_s14 = smov 0  }
   0x2 LB: > { %s25_s15 = sadd.s32 1, %s787_s13  ;;  %p599_p0 = scmp.ge.s32.totalorder %s791_s14, 1  ;;  %s791_s14 = sphi %s818_s14, %s13_s14   ;;  %s787_s13 = sphi %s816_s13, %s936_s13   ;;  %s783_s12 = sphi %s814_s12, %s935_s12  }
   0x3   : > { %p26_p1 = scmp.ge.s32.totalorder %s25_s15, 2  ;;  %p189_p2 = scmp.lt.s32.totalorder %s791_s14, 3 }
   0x5   : > { %s938_s15 = smov (%p26_p1, %s25_s15), 0  ;;  %p190_p3 = pnand %p599_p0, %p189_p2 }
   0x6   : > { %s600_s16 = sshll.u32 (!%p190_p3), %s783_s12, 2  ;;  %s602_s17 = sshll.u32 (!%p190_p3), %s783_s12, 6 }
   0x7   : > { %193 = sbr.rel (%p190_p3) target bundleno = 293 (0x125), region = 32  ;;  %p233_p4 = scmp.lt.s32.totalorder (!%p190_p3), %s600_s16, 7 }
   0x8   : > { %p241_p5 = scmp.lt.s32.totalorder (!%p190_p3), %s602_s17, 127  ;;  %p604_p6 = scmp.ne.s32.totalorder (!%p190_p3), %s783_s12, 0 }
   0xe   : > { %s940_s16 = smov (!%p233_p4, %s600_s16), 7  ;;  %s942_s17 = smov (!%p241_p5, %s602_s17), 127 }
   0xf   : > { %s601_s18 = sshll.u32 %s940_s16, 3  ;;  %s603_s22 = sshll.u32 %s942_s17, 3  ;;  %v793_v0 = vmov (!%p604_p6), 0.0  }
  0x10   : > { %s839_s21 = scalar_lea.vmem %s931_s0, %s601_s18  ;;  %s844_s25 = scalar_lea.vmem %s932_s1, %s603_s22  ;;  %263 = vst [vmem:[#allocation2] sm:$0xff] (!%p604_p6), %v793_v0 }
  0x11   : > { %262 = sbr.rel (%p604_p6) target bundleno = 24 (0x18), region = 36 }
  0x18 PF: > { %v285_v1 = vld [vmem:[%s844_s25 + $0x80] sm:$0xff]  ;;  %v286_v2 = vld [vmem:[%s844_s25 + $0x88] sm:$0xff]  ;;  %v287_v12 = vld [vmem:[%s844_s25 + $0x90] sm:$0xff]  ;;  %p605_p7 = scmp.ne.s32.totalorder %s783_s12, 1 }
  0x19   : > { %v317_v3 = vld [vmem:[%s844_s25 + $0x180] sm:$0xff]  ;;  %v680_v4 = vpack.c.bf16 %v286_v2, %v285_v1  ;;  %v318_v5 = vld [vmem:[%s844_s25 + $0x188] sm:$0xff]  ;;  %v288_v14 = vld [vmem:[%s844_s25 + $0x98] sm:$0xff] }
  0x1a   : > { %v269_v6 = vld [vmem:[%s844_s25] sm:$0xff]  ;;  %v270_v7 = vld [vmem:[%s844_s25 + $0x8] sm:$0xff]  ;;  %v712_v8 = vpack.c.bf16 %v318_v5, %v317_v3  ;;  %v319_v15 = vld [vmem:[%s844_s25 + $0x190] sm:$0xff]  ;;  %v684_v17 = vpack.c.bf16 %v288_v14, %v287_v12 }
  0x1b   : > { %v682_v9 = vpack.c.bf16 %v270_v7, %v269_v6  ;;  %v301_v10 = vld [vmem:[%s844_s25 + $0x100] sm:$0xff]  ;;  %v302_v11 = vld [vmem:[%s844_s25 + $0x108] sm:$0xff]  ;;  %681 = vmatprep.subr.bf16.mxu0 %v680_v4  ;;  %v320_v16 = vld [vmem:[%s844_s25 + $0x198] sm:$0xff] }
  0x1c   : > { %v714_v13 = vpack.c.bf16 %v302_v11, %v301_v10  ;;  %713 = vmatprep.subr.bf16.mxu1 %v712_v8  ;;  %v716_v18 = vpack.c.bf16 %v320_v16, %v319_v15  ;;  %v271_v19 = vld [vmem:[%s844_s25 + $0x10] sm:$0xff]  ;;  %v272_v20 = vld [vmem:[%s844_s25 + $0x18] sm:$0xff]  ;;  %v289_v24 = vld [vmem:[%s844_s25 + $0xa0] sm:$0xff] }
  0x1d   : > { %683 = vmatpush3.bf16.msra.mxu0 %v682_v9  ;;  %v303_v21 = vld [vmem:[%s844_s25 + $0x110] sm:$0xff]  ;;  %v686_v22 = vpack.c.bf16 %v272_v20, %v271_v19  ;;  %v304_v23 = vld [vmem:[%s844_s25 + $0x118] sm:$0xff]  ;;  %v290_v25 = vld [vmem:[%s844_s25 + $0xa8] sm:$0xff] }
  0x1e   : > { %715 = vmatpush3.bf16.msra.mxu1 %v714_v13  ;;  %685 = vmatprep.subr.bf16.mxu0 %v684_v17  ;;  %v718_v26 = vpack.c.bf16 %v304_v23, %v303_v21  ;;  %v688_v27 = vpack.c.bf16 %v290_v25, %v289_v24  ;;  %v321_v28 = vld [vmem:[%s844_s25 + $0x1a0] sm:$0xff]  ;;  %v322_v29 = vld [vmem:[%s844_s25 + $0x1a8] sm:$0xff]  ;;  %v291_v36 = vld [vmem:[%s844_s25 + $0xb0] sm:$0xff] }
  0x1f   : > { %717 = vmatprep.subr.bf16.mxu1 %v716_v18  ;;  %v273_v30 = vld [vmem:[%s844_s25 + $0x20] sm:$0xff]  ;;  %v720_v31 = vpack.c.bf16 %v322_v29, %v321_v28  ;;  %v274_v32 = vld [vmem:[%s844_s25 + $0x28] sm:$0xff]  ;;  %v292_v37 = vld [vmem:[%s844_s25 + $0xb8] sm:$0xff] }
  0x20   : > { %v305_v33 = vld [vmem:[%s844_s25 + $0x120] sm:$0xff]  ;;  %v306_v34 = vld [vmem:[%s844_s25 + $0x128] sm:$0xff]  ;;  %v690_v35 = vpack.c.bf16 %v274_v32, %v273_v30  ;;  %v323_v38 = vld [vmem:[%s844_s25 + $0x1b0] sm:$0xff]  ;;  %v692_v40 = vpack.c.bf16 %v292_v37, %v291_v36 }
  0x21   : > { %687 = vmatpush3.bf16.msra.mxu0 %v686_v22  ;;  %v722_v39 = vpack.c.bf16 %v306_v34, %v305_v33  ;;  %v324_v41 = vld [vmem:[%s844_s25 + $0x1b8] sm:$0xff]  ;;  %v275_v42 = vld [vmem:[%s844_s25 + $0x30] sm:$0xff]  ;;  %v293_v47 = vld [vmem:[%s844_s25 + $0xc0] sm:$0xff] }
  0x22   : > { %719 = vmatpush3.bf16.msra.mxu1 %v718_v26  ;;  %689 = vmatprep.subr.bf16.mxu0 %v688_v27  ;;  %v276_v43 = vld [vmem:[%s844_s25 + $0x38] sm:$0xff]  ;;  %v724_v44 = vpack.c.bf16 %v324_v41, %v323_v38  ;;  %v307_v45 = vld [vmem:[%s844_s25 + $0x130] sm:$0xff]  ;;  %v294_v48 = vld [vmem:[%s844_s25 + $0xc8] sm:$0xff] }
  0x23   : > { %721 = vmatprep.subr.bf16.mxu1 %v720_v31  ;;  %v308_v46 = vld [vmem:[%s844_s25 + $0x138] sm:$0xff]  ;;  %v325_v49 = vld [vmem:[%s844_s25 + $0x1c0] sm:$0xff]  ;;  %v326_v50 = vld [vmem:[%s844_s25 + $0x1c8] sm:$0xff]  ;;  %v694_v51 = vpack.c.bf16 %v276_v43, %v275_v42  ;;  %v696_v53 = vpack.c.bf16 %v294_v48, %v293_v47 }
  0x24   : > { %v726_v52 = vpack.c.bf16 %v308_v46, %v307_v45  ;;  %v277_v54 = vld [vmem:[%s844_s25 + $0x40] sm:$0xff]  ;;  %v278_v55 = vld [vmem:[%s844_s25 + $0x48] sm:$0xff]  ;;  %v728_v57 = vpack.c.bf16 %v326_v50, %v325_v49  ;;  %v295_v59 = vld [vmem:[%s844_s25 + $0xd0] sm:$0xff] }
  0x25   : > { %691 = vmatpush3.bf16.msra.mxu0 %v690_v35  ;;  %v309_v56 = vld [vmem:[%s844_s25 + $0x140] sm:$0xff]  ;;  %v310_v58 = vld [vmem:[%s844_s25 + $0x148] sm:$0xff]  ;;  %v296_v60 = vld [vmem:[%s844_s25 + $0xd8] sm:$0xff]  ;;  %v698_v63 = vpack.c.bf16 %v278_v55, %v277_v54 }
  0x26   : > { %723 = vmatpush3.bf16.msra.mxu1 %v722_v39  ;;  %693 = vmatprep.subr.bf16.mxu0 %v692_v40  ;;  %v327_v61 = vld [vmem:[%s844_s25 + $0x1d0] sm:$0xff]  ;;  %v328_v62 = vld [vmem:[%s844_s25 + $0x1d8] sm:$0xff]  ;;  %v730_v0 = vpack.c.bf16 %v310_v58, %v309_v56  ;;  %v700_v1 = vpack.c.bf16 %v296_v60, %v295_v59  ;;  %v297_v7 = vld [vmem:[%s844_s25 + $0xe0] sm:$0xff] }
  0x27   : > { %725 = vmatprep.subr.bf16.mxu1 %v724_v44  ;;  %v279_v2 = vld [vmem:[%s844_s25 + $0x50] sm:$0xff]  ;;  %v280_v3 = vld [vmem:[%s844_s25 + $0x58] sm:$0xff]  ;;  %v732_v5 = vpack.c.bf16 %v328_v62, %v327_v61  ;;  %v298_v8 = vld [vmem:[%s844_s25 + $0xe8] sm:$0xff] }
  0x28   : > { %v311_v4 = vld [vmem:[%s844_s25 + $0x150] sm:$0xff]  ;;  %v312_v6 = vld [vmem:[%s844_s25 + $0x158] sm:$0xff]  ;;  %v329_v9 = vld [vmem:[%s844_s25 + $0x1e0] sm:$0xff]  ;;  %v702_v11 = vpack.c.bf16 %v280_v3, %v279_v2  ;;  %v704_v15 = vpack.c.bf16 %v298_v8, %v297_v7 }
  0x29   : > { %695 = vmatpush3.bf16.msra.mxu0 %v694_v51  ;;  %v330_v10 = vld [vmem:[%s844_s25 + $0x1e8] sm:$0xff]  ;;  %v281_v12 = vld [vmem:[%s844_s25 + $0x60] sm:$0xff]  ;;  %v734_v14 = vpack.c.bf16 %v312_v6, %v311_v4  ;;  %v268_v18 = vld [vmem:[%s839_s21 + $0x18] sm:$0xff] }
  0x2a   : > { %727 = vmatpush3.bf16.msra.mxu1 %v726_v52  ;;  %697 = vmatprep.subr.bf16.mxu0 %v696_v53  ;;  %v282_v13 = vld [vmem:[%s844_s25 + $0x68] sm:$0xff]  ;;  %v313_v16 = vld [vmem:[%s844_s25 + $0x160] sm:$0xff]  ;;  %v736_v19 = vpack.c.bf16 %v330_v10, %v329_v9  ;;  %v299_v21 = vld [vmem:[%s844_s25 + $0xf0] sm:$0xff] }
  0x2b   : > { %729 = vmatprep.subr.bf16.mxu1 %v728_v57  ;;  %v266_v17 = vld [vmem:[%s839_s21 + $0x8] sm:$0xff]  ;;  %v300_v22 = vld [vmem:[%s844_s25 + $0xf8] sm:$0xff]  ;;  %v331_v23 = vld [vmem:[%s844_s25 + $0x1f0] sm:$0xff]  ;;  %467 = vmatprep.mubr.f32.mxu1 %v268_v18  ;;  %v706_v25 = vpack.c.bf16 %v282_v13, %v281_v12 }
  0x2c   : > { %v314_v20 = vld [vmem:[%s844_s25 + $0x168] sm:$0xff]  ;;  %397 = vmatprep.mubr.f32.mxu0 %v266_v17  ;;  %v332_v24 = vld [vmem:[%s844_s25 + $0x1f8] sm:$0xff]  ;;  %v708_v27 = vpack.c.bf16 %v300_v22, %v299_v21  ;;  %v283_v28 = vld [vmem:[%s844_s25 + $0x70] sm:$0xff] }
  0x2d   : > { %699 = vmatpush3.bf16.msra.mxu0 %v698_v63  ;;  %v738_v26 = vpack.c.bf16 %v314_v20, %v313_v16  ;;  %v284_v29 = vld [vmem:[%s844_s25 + $0x78] sm:$0xff]  ;;  %v740_v30 = vpack.c.bf16 %v332_v24, %v331_v23  ;;  %v315_v31 = vld [vmem:[%s844_s25 + $0x170] sm:$0xff]  ;;  %v265_v35 = vld [vmem:[%s839_s21] sm:$0xff] }
  0x2e   : > { %731 = vmatpush3.bf16.msra.mxu1 %v730_v0  ;;  %701 = vmatprep.subr.bf16.mxu0 %v700_v1  ;;  %v316_v32 = vld [vmem:[%s844_s25 + $0x178] sm:$0xff]  ;;  %v710_v33 = vpack.c.bf16 %v284_v29, %v283_v28  ;;  %v267_v36 = vld [vmem:[%s839_s21 + $0x10] sm:$0xff]  ;;  %v264_v43 = vld [vmem:[#allocation2] sm:$0xff] }
  0x2f   : > { %733 = vmatprep.subr.bf16.mxu1 %v732_v5  ;;  %v742_v34 = vpack.c.bf16 %v316_v32, %v315_v31  ;;  %v606_v47 = vld [vmem:[%s933_s2] ss:$0 sm:$0xff] (!%p605_p7) }
  0x31   : > { %703 = vmatpush3.bf16.msra.mxu0 %v702_v11 }
  0x32   : > { %735 = vmatpush3.bf16.msra.mxu1 %v734_v14  ;;  %705 = vmatprep.subr.bf16.mxu0 %v704_v15 }
  0x33   : > { %737 = vmatprep.subr.bf16.mxu1 %v736_v19 }
  0x35   : > { %707 = vmatpush3.bf16.msra.mxu0 %v706_v25 }
  0x36   : > { %739 = vmatpush3.bf16.msra.mxu1 %v738_v26  ;;  %709 = vmatprep.subr.bf16.mxu0 %v708_v27 }
  0x37   : > { %741 = vmatprep.subr.bf16.mxu1 %v740_v30 }
  0x39   : > { %711 = vmatpush3.bf16.msra.mxu0 %v710_v33 }
  0x3a   : > { %743 = vmatpush3.bf16.msra.mxu1 %v742_v34 }
  0x3c   : > { %398 = vmatmul.mubr.f32.vlgmr.msra.gmra.mrb[0].mxu0 %v265_v35 }
  0x3d   : > { %468 = vmatmul.mubr.f32.vlgmr.msra.gmra.mrb[0].mxu1 %v267_v36 }
 0x10f   : > { %v642_v37 = vpop.f32.mrb[0].mxu0 }
 0x110   : > { %v677_v38 = vpop.f32.mrb[0].mxu1  ;;  %v643_v39 = vpop.f32.mrb[1].mxu0 }
 0x111   : > { %v644_v40 = vadd.f32 %v643_v39, %v642_v37  ;;  %v678_v41 = vpop.f32.mrb[1].mxu1 }
 0x112   : > { %v679_v42 = vadd.f32 %v678_v41, %v677_v38  ;;  %478 = sbr.rel (%p605_p7) target bundleno = 293 (0x125), region = 40 }
 0x114   : > { %v470_v44 = vadd.f32 %v679_v42, %v644_v40 }
 0x116   : > { %v473_v45 = vadd.f32 %v470_v44, %v264_v43 }
 0x118   : > { %474 = vst [vmem:[#allocation2] sm:$0xff] %v473_v45 }
 0x11f   : > { %v479_v46 = vld [vmem:[#allocation2] sm:$0xff] }
 0x120   : > { %v487_v48 = vadd.f32 %v606_v47, %v479_v46 }
 0x122   : > { %v488_v49 = vmax.f32 %v487_v48, 0.0 }
 0x124   : > { %489 = vst [vmem:[%s934_s3] sm:$0xff] %v488_v49 }
 0x125 PF: > { %s13_s14 = sadd.s32 1, %s791_s14   ;;  %s935_s12 = smov %s787_s13 }
 0x126   : > { %p10_p8 = scmp.ge.s32.totalorder %s13_s14, 4   ;;  %s936_s13 = smov %s938_s15 }
 0x128   :  { %12 = sbr.rel (!%p10_p8) target bundleno = 2 (0x2), region = 76 }

// kernel: conv_forward.10
= control target key start
LH: loop header
LB: loop body
LE: loop exit
PB: predicated region body
PF: predicated region fallthrough
CT: control target
= control target key end

     0   :  { %v207_v0 = vmov 0.0|0.0   ;;  %vm208_vm0 = vmmov 0   ;;  %v209_v4 = vmov 0.0   ;;  %s287_s1 = inlined_call_operand.vmem [shape: f32[128,128], index: 1, kind: input, shape index: {}]   ;;  %s288_s0 = inlined_call_operand.vmem [shape: f32[8,128], index: 0, kind: input, shape index: {}]   ;;  %s289_s2 = inlined_call_operand.vmem [shape: f32[1,128], index: 2, kind: input, shape index: {}]   ;;  %s290_s3 = inlined_call_operand.vmem [shape: f32[8,128], index: 3, kind: output, shape index: {}]  }
   0x1   :  { %180 = vmatprep.subr.bf16.mxu0 %v207_v0  ;;  %v21_v1 = vld [vmem:[%s287_s1] sm:$0xff]  ;;  %v22_v2 = vld [vmem:[%s287_s1 + $0x8] sm:$0xff]  ;;  %v23_v3 = vld [vmem:[%s287_s1 + $0x10] sm:$0xff]  ;;  %177 = vmatprep.mubr.msk.f32.mxu0 %vm208_vm0, %v209_v4 }
   0x2   :  { %v181_v5 = vpack.c.bf16 %v22_v2, %v21_v1  ;;  %v24_v6 = vld [vmem:[%s287_s1 + $0x18] sm:$0xff]  ;;  %v25_v8 = vld [vmem:[%s287_s1 + $0x20] sm:$0xff]  ;;  %v26_v9 = vld [vmem:[%s287_s1 + $0x28] sm:$0xff] }
   0x3   :  { %v184_v7 = vpack.c.bf16 %v24_v6, %v23_v3  ;;  %v187_v10 = vpack.c.bf16 %v26_v9, %v25_v8  ;;  %v27_v11 = vld [vmem:[%s287_s1 + $0x30] sm:$0xff]  ;;  %v28_v12 = vld [vmem:[%s287_s1 + $0x38] sm:$0xff]  ;;  %v29_v14 = vld [vmem:[%s287_s1 + $0x40] sm:$0xff] }
   0x4   :  { %182 = vmatpush3.bf16.msra.mxu0 %v181_v5  ;;  %v190_v13 = vpack.c.bf16 %v28_v12, %v27_v11  ;;  %v30_v15 = vld [vmem:[%s287_s1 + $0x48] sm:$0xff]  ;;  %v31_v17 = vld [vmem:[%s287_s1 + $0x50] sm:$0xff]  ;;  %v32_v18 = vld [vmem:[%s287_s1 + $0x58] sm:$0xff] }
   0x5   :  { %183 = vmatprep.subr.bf16.mxu0 %v207_v0  ;;  %v193_v16 = vpack.c.bf16 %v30_v15, %v29_v14  ;;  %v196_v19 = vpack.c.bf16 %v32_v18, %v31_v17  ;;  %v33_v20 = vld [vmem:[%s287_s1 + $0x60] sm:$0xff]  ;;  %v34_v21 = vld [vmem:[%s287_s1 + $0x68] sm:$0xff]  ;;  %v35_v23 = vld [vmem:[%s287_s1 + $0x70] sm:$0xff] }
   0x6   :  { %v199_v22 = vpack.c.bf16 %v34_v21, %v33_v20  ;;  %v36_v24 = vld [vmem:[%s287_s1 + $0x78] sm:$0xff]  ;;  %v20_v26 = vld [vmem:[%s288_s0] sm:$0xff] }
   0x7   :  { %v202_v25 = vpack.c.bf16 %v36_v24, %v35_v23  ;;  %v127_v27 = vld [vmem:[%s289_s2] ss:$0 sm:$0xff] }
   0x8   :  { %185 = vmatpush3.bf16.msra.mxu0 %v184_v7 }
   0x9   :  { %186 = vmatprep.subr.bf16.mxu0 %v207_v0 }
   0xc   :  { %188 = vmatpush3.bf16.msra.mxu0 %v187_v10 }
   0xd   :  { %189 = vmatprep.subr.bf16.mxu0 %v207_v0 }
  0x10   :  { %191 = vmatpush3.bf16.msra.mxu0 %v190_v13 }
  0x11   :  { %192 = vmatprep.subr.bf16.mxu0 %v207_v0 }
  0x14   :  { %194 = vmatpush3.bf16.msra.mxu0 %v193_v16 }
  0x15   :  { %195 = vmatprep.subr.bf16.mxu0 %v207_v0 }
  0x18   :  { %197 = vmatpush3.bf16.msra.mxu0 %v196_v19 }
  0x19   :  { %198 = vmatprep.subr.bf16.mxu0 %v207_v0 }
  0x1c   :  { %200 = vmatpush3.bf16.msra.mxu0 %v199_v22 }
  0x1d   :  { %201 = vmatprep.subr.bf16.mxu0 %v207_v0 }
  0x20   :  { %203 = vmatpush3.bf16.msra.mxu0 %v202_v25 }
  0x23   :  { %178 = vmatmul.mubr.f32.vlgmr.msra.gmra.mrb[0].mxu0 %v20_v26 }
  0xf6   :  { %v103_v28 = vpop.f32.mrb[0].mxu0 }
  0xf7   :  { %v120_v29 = vadd.f32 %v127_v27, %v103_v28  ;;  %v179_v30 = vpop.f32.mrb[1].mxu0 }
  0xf9   :  { %v121_v31 = vmax.f32 %v120_v29, 0.0 }
  0xfb   :  { %122 = vst [vmem:[%s290_s3] sm:$0xff] %v121_v31 }

// kernel: conv_forward.11
= control target key start
LH: loop header
LB: loop body
LE: loop exit
PB: predicated region body
PF: predicated region fallthrough
CT: control target
= control target key end

     0   :  { %v213_v0 = vmov 0.0|0.0   ;;  %vm214_vm0 = vmmov 0   ;;  %v215_v4 = vmov 0.0   ;;  %v108_v27 = vlaneseq  ;;  %s293_s1 = inlined_call_operand.vmem [shape: f32[128,128], index: 1, kind: input, shape index: {}]   ;;  %s294_s0 = inlined_call_operand.vmem [shape: f32[8,128], index: 0, kind: input, shape index: {}]   ;;  %s295_s2 = inlined_call_operand.vmem [shape: f32[1,128], index: 2, kind: input, shape index: {}]   ;;  %s296_s3 = inlined_call_operand.vmem [shape: f32[8,128], index: 3, kind: output, shape index: {}]  }
   0x1   :  { %182 = vmatprep.subr.bf16.mxu0 %v213_v0  ;;  %v15_v1 = vld [vmem:[%s293_s1] sm:$0xff]  ;;  %v16_v2 = vld [vmem:[%s293_s1 + $0x8] sm:$0xff]  ;;  %v17_v3 = vld [vmem:[%s293_s1 + $0x10] sm:$0xff]  ;;  %179 = vmatprep.mubr.msk.f32.mxu0 %vm214_vm0, %v215_v4 }
   0x2   :  { %v183_v5 = vpack.c.bf16 %v16_v2, %v15_v1  ;;  %v18_v6 = vld [vmem:[%s293_s1 + $0x18] sm:$0xff]  ;;  %v19_v8 = vld [vmem:[%s293_s1 + $0x20] sm:$0xff]  ;;  %v20_v9 = vld [vmem:[%s293_s1 + $0x28] sm:$0xff]  ;;  %v109_v28 = vand.u32 127, %v108_v27 }
   0x3   :  { %v186_v7 = vpack.c.bf16 %v18_v6, %v17_v3  ;;  %v189_v10 = vpack.c.bf16 %v20_v9, %v19_v8  ;;  %v21_v11 = vld [vmem:[%s293_s1 + $0x30] sm:$0xff]  ;;  %v22_v12 = vld [vmem:[%s293_s1 + $0x38] sm:$0xff]  ;;  %v23_v14 = vld [vmem:[%s293_s1 + $0x40] sm:$0xff] }
   0x4   :  { %184 = vmatpush3.bf16.msra.mxu0 %v183_v5  ;;  %v192_v13 = vpack.c.bf16 %v22_v12, %v21_v11  ;;  %v24_v15 = vld [vmem:[%s293_s1 + $0x48] sm:$0xff]  ;;  %v25_v17 = vld [vmem:[%s293_s1 + $0x50] sm:$0xff]  ;;  %v26_v18 = vld [vmem:[%s293_s1 + $0x58] sm:$0xff]  ;;  %vm110_vm1 = vcmp.lt.s32.totalorder %v109_v28, 10 }
   0x5   :  { %185 = vmatprep.subr.bf16.mxu0 %v213_v0  ;;  %v195_v16 = vpack.c.bf16 %v24_v15, %v23_v14  ;;  %v198_v19 = vpack.c.bf16 %v26_v18, %v25_v17  ;;  %v27_v20 = vld [vmem:[%s293_s1 + $0x60] sm:$0xff]  ;;  %v28_v21 = vld [vmem:[%s293_s1 + $0x68] sm:$0xff]  ;;  %v29_v23 = vld [vmem:[%s293_s1 + $0x70] sm:$0xff] }
   0x6   :  { %v201_v22 = vpack.c.bf16 %v28_v21, %v27_v20  ;;  %v30_v24 = vld [vmem:[%s293_s1 + $0x78] sm:$0xff]  ;;  %v14_v26 = vld [vmem:[%s294_s0] sm:$0xff] }
   0x7   :  { %v204_v25 = vpack.c.bf16 %v30_v24, %v29_v23  ;;  %v129_v29 = vld [vmem:[%s295_s2] ss:$0 sm:$0xff] }
   0x8   :  { %187 = vmatpush3.bf16.msra.mxu0 %v186_v7 }
   0x9   :  { %188 = vmatprep.subr.bf16.mxu0 %v213_v0 }
   0xc   :  { %190 = vmatpush3.bf16.msra.mxu0 %v189_v10 }
   0xd   :  { %191 = vmatprep.subr.bf16.mxu0 %v213_v0 }
  0x10   :  { %193 = vmatpush3.bf16.msra.mxu0 %v192_v13 }
  0x11   :  { %194 = vmatprep.subr.bf16.mxu0 %v213_v0 }
  0x14   :  { %196 = vmatpush3.bf16.msra.mxu0 %v195_v16 }
  0x15   :  { %197 = vmatprep.subr.bf16.mxu0 %v213_v0 }
  0x18   :  { %199 = vmatpush3.bf16.msra.mxu0 %v198_v19 }
  0x19   :  { %200 = vmatprep.subr.bf16.mxu0 %v213_v0 }
  0x1c   :  { %202 = vmatpush3.bf16.msra.mxu0 %v201_v22 }
  0x1d   :  { %203 = vmatprep.subr.bf16.mxu0 %v213_v0 }
  0x20   :  { %205 = vmatpush3.bf16.msra.mxu0 %v204_v25 }
  0x23   :  { %180 = vmatmul.mubr.f32.vlgmr.msra.gmra.mrb[0].mxu0 %v14_v26 }
  0xf6   :  { %v104_v30 = vpop.f32.mrb[0].mxu0 }
  0xf7   :  { %v105_v31 = vadd.f32 %v129_v29, %v104_v30  ;;  %v181_v32 = vpop.f32.mrb[1].mxu0 }
  0xf9   :  { %v111_v33 = vsel %vm110_vm1, %v105_v31, -1e+30 }
  0xfa   :  { %112 = vmax.xlane.f32.xlu0 %v111_v33 }
 0x187   :  { %v113_v34 = vpop.xlane.xlu0 %112 }
 0x188   :  { %v114_v35 = vsub.f32 %v111_v33, %v113_v34 }
 0x18a   :  { %v115_v36 = vmul.f32 1.442695, %v114_v35 }
 0x18c   :  { %209 = vpow2.f32 %v115_v36 }
 0x196   :  { %v210_v37 = vpop.eup %209 }
 0x197   :  { %v117_v38 = vsel %vm110_vm1, %v210_v37, 0.0 }
 0x198   :  { %118 = vadd.xlane.f32.xlu0 %v117_v38 }
 0x225   :  { %v119_v39 = vpop.xlane.xlu0 %118 }
 0x226   :  { %211 = vlog2.f32 %v119_v39 }
 0x230   :  { %v212_v40 = vpop.eup %211 }
 0x231   :  { %v121_v41 = vmul.f32 0.6931472, %v212_v40 }
 0x233   :  { %v122_v42 = vadd.f32 %v121_v41, %v113_v34 }
 0x235   :  { %v123_v43 = vsub.f32 %v105_v31, %v122_v42 }
 0x237   :  { %124 = vst [vmem:[%s296_s3] sm:$0xff] %v123_v43 }

</bundles_post_ra>
